<compile_context>
chip_gen: v6e
topology: v6e:2x2x1
jax: 0.10.0
libtpu: 0.0.40
codegen_flags: <defaults>
</compile_context>

<pallas_src>
import functools

import jax
import jax.numpy as jnp
from jax import tree_util
from jax.experimental import pallas as pl
from jax.experimental.pallas import tpu as pltpu

BN_EPS = 1e-5


# --------------------------------------------------------------------------------------
# Conv parameter container (weights pre-folded / pre-padded; meta is static under jit)
# --------------------------------------------------------------------------------------
class ConvParams:
    """w: bf16 (Kp, Op) = (KH*KW*Cin padded to 128, Cout padded to 128), scale folded in.
    b: f32 (1, Op) per-output-channel shift (BN shift or conv bias)."""

    def __init__(self, w, b, kh, kw, stride, padding, out_channels):
        self.w = w
        self.b = b
        self.kh = kh
        self.kw = kw
        self.stride = stride
        self.padding = padding
        self.out_channels = out_channels


def _conv_params_flatten(cp):
    return (cp.w, cp.b), (cp.kh, cp.kw, cp.stride, cp.padding, cp.out_channels)


def _conv_params_unflatten(aux, children):
    w, b = children
    return ConvParams(w, b, *aux)


tree_util.register_pytree_node(ConvParams, _conv_params_flatten, _conv_params_unflatten)


# --------------------------------------------------------------------------------------
# Small helpers
# --------------------------------------------------------------------------------------
def _pad_axis(x, axis, mult):
    pad = (-x.shape[axis]) % mult
    if pad == 0:
        return x
    widths = [(0, 0)] * x.ndim
    widths[axis] = (0, pad)
    return jnp.pad(x, widths)


def _pick(size, candidates):
    # The smallest candidate always divides the (pre-padded) size, so this never silently
    # falls back to a whole oversized dimension.
    for c in candidates:
        if c <= size and size % c == 0:
            return c
    return size


# --------------------------------------------------------------------------------------
# Pallas kernels
# --------------------------------------------------------------------------------------
def _matmul_kernel(*refs, relu, has_residual):
    """Tiled (M,K)@(K,N), bf16 operands, f32 accumulator.
    Epilogue (last k-step): + per-column shift, optional + residual, optional ReLU, cast."""
    if has_residual:
        a_ref, w_ref, b_ref, r_ref, o_ref, acc_ref = refs
    else:
        a_ref, w_ref, b_ref, o_ref, acc_ref = refs
        r_ref = None
    k = pl.program_id(2)

    @pl.when(k == 0)
    def _():
        acc_ref[...] = jnp.zeros_like(acc_ref)

    acc_ref[...] += jnp.dot(a_ref[...], w_ref[...], preferred_element_type=jnp.float32)

    @pl.when(k == pl.num_programs(2) - 1)
    def _():
        y = acc_ref[...] + b_ref[...]
        if has_residual:
            y = y + r_ref[...].astype(jnp.float32)
        if relu:
            y = jnp.maximum(y, 0.0)
        o_ref[...] = y.astype(o_ref.dtype)


def _maxpool_kernel(v0_ref, v1_ref, v2_ref, o_ref):
    """Inputs are the 3 column-shifted stride-2 views of the padded NHWC activation,
    each (1, H+2, Wo, C).  Row 3-max + stride-2 row subsample are done here via an
    even/odd split (leading-dim reshape only; the tiled (sublane, lane) dims are untouched)."""
    cm = jnp.maximum(jnp.maximum(v0_ref[...], v1_ref[...]), v2_ref[...])
    _, hp, wo, c = cm.shape
    ho = o_ref.shape[1]
    cm = cm.reshape(1, hp // 2, 2, wo, c)
    even = cm[:, :, 0]      # padded rows 0, 2, ..., hp-2
    odd = cm[:, :, 1]       # padded rows 1, 3, ..., hp-1
    o_ref[...] = jnp.maximum(jnp.maximum(even[:, :ho], odd[:, :ho]), even[:, 1:ho + 1])


# --------------------------------------------------------------------------------------
# Pallas wrappers
# --------------------------------------------------------------------------------------
def matmul_bias_act(a, w_p, b_p, n_out, *, relu, residual=None, out_dtype=jnp.bfloat16):
    """maybe_relu(a @ w + b [+ residual]) sliced back to (M, n_out).
    w_p / b_p are pre-padded to 128-multiples at param-build time."""
    m, k = a.shape
    kp, np_ = w_p.shape

    m_mult = 128 if m >= 128 else 16
    a_p = _pad_axis(_pad_axis(a.astype(jnp.bfloat16), 1, 128), 0, m_mult)
    mp = a_p.shape[0]
    assert a_p.shape[1] == kp, (a_p.shape, w_p.shape)

    tm = _pick(mp, (512, 256, 128, 64, 32, 16, 8))
    tn = _pick(np_, (512, 256, 128))
    tk = _pick(kp, (1024, 512, 384, 256, 128))
    grid = (mp // tm, np_ // tn, kp // tk)

    operands = [a_p, w_p, b_p]
    in_specs = [
        pl.BlockSpec((tm, tk), lambda i, j, kk: (i, kk)),
        pl.BlockSpec((tk, tn), lambda i, j, kk: (kk, j)),
        pl.BlockSpec((1, tn), lambda i, j, kk: (0, j)),
    ]
    has_res = residual is not None
    if has_res:
        r_p = _pad_axis(_pad_axis(residual.astype(jnp.bfloat16), 1, 128), 0, m_mult)
        assert r_p.shape == (mp, np_), (r_p.shape, (mp, np_))
        operands.append(r_p)
        in_specs.append(pl.BlockSpec((tm, tn), lambda i, j, kk: (i, j)))

    out = pl.pallas_call(
        functools.partial(_matmul_kernel, relu=relu, has_residual=has_res),
        out_shape=jax.ShapeDtypeStruct((mp, np_), out_dtype),
        grid_spec=pltpu.PrefetchScalarGridSpec(
            num_scalar_prefetch=0,
            grid=grid,
            in_specs=in_specs,
            out_specs=pl.BlockSpec((tm, tn), lambda i, j, kk: (i, j)),
            scratch_shapes=[pltpu.VMEM((tm, tn), jnp.float32)],
        ),
        compiler_params=pltpu.CompilerParams(
            dimension_semantics=("parallel", "parallel", "arbitrary"),
            vmem_limit_bytes=40 * 1024 * 1024,
        ),
    )(*operands)

    if (mp, np_) != (m, n_out):
        out = out[:m, :n_out]
    return out


def maxpool2d_3x3_s2_p1(x):
    """MaxPool2d(kernel_size=3, stride=2, padding=1) on an NHWC tensor (H, W even)."""
    n, h, w, c = x.shape
    assert h % 2 == 0 and w % 2 == 0, (h, w)
    ho, wo = h // 2, w // 2
    xp = jnp.pad(x, ((0, 0), (1, 1), (1, 1), (0, 0)), constant_values=-jnp.inf)
    hp = h + 2
    # Column-shifted stride-2 views (cheap XLA strided slices); rows are handled in-kernel.
    views = [xp[:, :, kj:kj + 2 * wo:2, :] for kj in range(3)]
    return pl.pallas_call(
        _maxpool_kernel,
        out_shape=jax.ShapeDtypeStruct((n, ho, wo, c), x.dtype),
        grid_spec=pltpu.PrefetchScalarGridSpec(
            num_scalar_prefetch=0,
            grid=(n,),
            in_specs=[pl.BlockSpec((1, hp, wo, c), lambda b: (b, 0, 0, 0)) for _ in range(3)],
            out_specs=pl.BlockSpec((1, ho, wo, c), lambda b: (b, 0, 0, 0)),
        ),
        compiler_params=pltpu.CompilerParams(dimension_semantics=("parallel",)),
    )(*views)


# --------------------------------------------------------------------------------------
# Convolution = (optional NHWC im2col glue) + Pallas matmul with fused epilogue
# --------------------------------------------------------------------------------------
def _im2col_nhwc(x, kh, kw, stride, padding):
    n, h, w, c = x.shape
    ph, pw = padding
    xp = jnp.pad(x, ((0, 0), (ph, ph), (pw, pw), (0, 0)))
    ho = (h + 2 * ph - kh) // stride + 1
    wo = (w + 2 * pw - kw) // stride + 1
    cols = [xp[:, ki:ki + stride * ho:stride, kj:kj + stride * wo:stride, :]
            for ki in range(kh) for kj in range(kw)]
    patches = jnp.stack(cols, axis=3)                   # (N, Ho, Wo, KH*KW, C) — (ki,kj,c) order
    return patches.reshape(n * ho * wo, kh * kw * c), ho, wo


def conv2d(x, cp, *, relu, residual=None, out_dtype=jnp.bfloat16):
    """NHWC conv (PyTorch weight semantics) -> Pallas matmul with fused shift/residual/ReLU."""
    n = x.shape[0]
    ph, pw = cp.padding
    if cp.kh == 1 and cp.kw == 1 and ph == 0 and pw == 0:
        if cp.stride != 1:
            x = x[:, ::cp.stride, ::cp.stride, :]
        ho, wo = x.shape[1], x.shape[2]
        a = x.reshape(n * ho * wo, x.shape[3])
    else:
        a, ho, wo = _im2col_nhwc(x, cp.kh, cp.kw, cp.stride, (ph, pw))
    res2d = None
    if residual is not None:
        res2d = residual.reshape(n * ho * wo, residual.shape[3])
    y = matmul_bias_act(a, cp.w, cp.b, cp.out_channels, relu=relu,
                        residual=res2d, out_dtype=out_dtype)
    return y.reshape(n, ho, wo, cp.out_channels)


# --------------------------------------------------------------------------------------
# Deterministic parameter construction (shapes of resnet101[:-2] + heads), pre-folded
# --------------------------------------------------------------------------------------
class ParamGen:
    def __init__(self, seed=0):
        self._key = jax.random.PRNGKey(seed)
        self._i = 0

    def _next(self):
        self._i += 1
        return jax.random.fold_in(self._key, self._i)

    def conv_weight(self, out_c, in_c, kh, kw):
        fan_in = in_c * kh * kw
        std = (2.0 / fan_in) ** 0.5
        return std * jax.random.normal(self._next(), (out_c, in_c, kh, kw), jnp.float32)

    def bias(self, n):
        return 0.01 * jax.random.normal(self._next(), (n,), jnp.float32)


def _fold_conv(w_oikk, scale, shift, stride, padding):
    """(O, Cin, KH, KW) weight -> pre-padded bf16 (KH*KW*Cin, O) matrix with the per-channel
    scale folded into the columns; shift kept as f32 (1, Op)."""
    o, cin, kh, kw = w_oikk.shape
    wm = w_oikk.transpose(2, 3, 1, 0).reshape(kh * kw * cin, o)   # rows ordered (ki, kj, cin)
    wm = wm * scale[None, :]
    wm = _pad_axis(_pad_axis(wm, 0, 128), 1, 128).astype(jnp.bfloat16)
    b = _pad_axis(shift.reshape(1, -1).astype(jnp.float32), 1, 128)
    return ConvParams(wm, b, kh, kw, stride, tuple(padding), o)


def make_conv(pg, out_c, in_c, k, *, stride=1, padding=(0, 0), bn=True, bias=False):
    w = pg.conv_weight(out_c, in_c, k, k)
    if bn:
        # Eval-mode BatchNorm at init stats (gamma=1, beta=0, mean=0, var=1) folded into w/b.
        scale = jnp.full((out_c,), (1.0 + BN_EPS) ** -0.5, jnp.float32)
        shift = jnp.zeros((out_c,), jnp.float32)
    else:
        scale = jnp.ones((out_c,), jnp.float32)
        shift = pg.bias(out_c) if bias else jnp.zeros((out_c,), jnp.float32)
    return _fold_conv(w, scale, shift, stride, padding)


def make_bottleneck(pg, inplanes, planes, stride):
    p = {
        "c1": make_conv(pg, planes, inplanes, 1),
        "c2": make_conv(pg, planes, planes, 3, stride=stride, padding=(1, 1)),
        "c3": make_conv(pg, planes * 4, planes, 1),
    }
    if stride != 1 or inplanes != planes * 4:
        p["cd"] = make_conv(pg, planes * 4, inplanes, 1, stride=stride)
    return p


def make_layer(pg, inplanes, planes, blocks, stride):
    layers = [make_bottleneck(pg, inplanes, planes, stride)]
    inplanes = planes * 4
    for _ in range(blocks - 1):
        layers.append(make_bottleneck(pg, inplanes, planes, 1))
    return layers, inplanes


def make_resnet101_trunk(pg):
    params = {"conv1": make_conv(pg, 64, 3, 7, stride=2, padding=(3, 3))}
    inplanes = 64
    params["layer1"], inplanes = make_layer(pg, inplanes, 64, 3, 1)
    params["layer2"], inplanes = make_layer(pg, inplanes, 128, 4, 2)
    params["layer3"], inplanes = make_layer(pg, inplanes, 256, 23, 2)
    params["layer4"], inplanes = make_layer(pg, inplanes, 512, 3, 2)
    return params


def make_heads(pg):
    return {
        "fc7_1": make_conv(pg, 1024, 2048, 1, bn=False, bias=True),
        "fc7_2": make_conv(pg, 2048, 1024, 7, padding=(3, 3), bn=False, bias=True),
        "fc7_3": make_conv(pg, 2048, 2048, 1, bn=False, bias=True),
        "fc8": make_conv(pg, 1000, 2048, 1, bn=False, bias=True),
    }


# --------------------------------------------------------------------------------------
# Forward passes (jitted per stage so the thin glue fuses around the Pallas calls)
# --------------------------------------------------------------------------------------
@jax.jit
def stem_forward(x, conv1_cp):
    x = conv2d(x, conv1_cp, relu=True)          # 7x7 / stride 2 (+ folded BN + ReLU)
    return maxpool2d_3x3_s2_p1(x)               # 3x3 / stride 2 / pad 1


@jax.jit
def bottleneck_forward(x, p):
    out = conv2d(x, p["c1"], relu=True)
    out = conv2d(out, p["c2"], relu=True)
    identity = conv2d(x, p["cd"], relu=False) if "cd" in p else x
    # Residual add + ReLU fused into the 3rd conv's matmul epilogue.
    return conv2d(out, p["c3"], relu=True, residual=identity)


@jax.jit
def heads_forward(x, hp):
    x = conv2d(x, hp["fc7_1"], relu=True)
    x = conv2d(x, hp["fc7_2"], relu=True)
    x = conv2d(x, hp["fc7_3"], relu=True)
    return conv2d(x, hp["fc8"], relu=False, out_dtype=jnp.float32)   # no ReLU on fc8


def resnet_trunk_forward(x, params):
    x = stem_forward(x, params["conv1"])
    for name in ("layer1", "layer2", "layer3", "layer4"):
        for blk in params[name]:
            x = bottleneck_forward(x, blk)
    return x


def image_module_resnet_forward(inputs_nchw, trunk_params, head_params):
    x = jnp.transpose(inputs_nchw, (0, 2, 3, 1)).astype(jnp.bfloat16)  # one-time NCHW -> NHWC
    feats = resnet_trunk_forward(x, trunk_params)                      # (N, H/32, W/32, 2048)
    out = heads_forward(feats, head_params)                            # (N, H/32, W/32, 1000) f32
    return jnp.transpose(out, (0, 3, 1, 2))                            # back to NCHW


# --------------------------------------------------------------------------------------
if __name__ == "__main__":
    key = jax.random.PRNGKey(0)
    # Small input consistent with the module: NCHW, 3 input channels, 64x64 spatial.
    x = jax.random.normal(key, (2, 3, 64, 64), jnp.float32)

    pg = ParamGen(seed=0)
    trunk_params = make_resnet101_trunk(pg)
    head_params = make_heads(pg)

    out = image_module_resnet_forward(x, trunk_params, head_params)
    out = jax.block_until_ready(out)

    assert out.shape == (2, 1000, 2, 2), out.shape
    assert out.dtype == jnp.float32
    assert bool(jnp.all(jnp.isfinite(out)))
    print("KERNEL_OK")
</pallas_src>

<mosaic_0001>
module attributes {stable_mosaic.version = 11 : i64} {
  func.func @_matmul_kernel(%arg0: i32, %arg1: i32, %arg2: i32, %arg3: memref<512x256xbf16, #tpu.memory_space<vmem>>, %arg4: memref<256x128xbf16, #tpu.memory_space<vmem>>, %arg5: memref<1x128xf32, #tpu.memory_space<vmem>>, %arg6: memref<512x128xbf16, #tpu.memory_space<vmem>>, %arg7: memref<512x128xf32, #tpu.memory_space<vmem>>) attributes {dimension_semantics = [#tpu.dimension_semantics<parallel>, #tpu.dimension_semantics<parallel>, #tpu.dimension_semantics<arbitrary>], iteration_bounds = array<i64: 4, 1, 1>, scalar_prefetch = 0 : i64, scratch_operands = 1 : i64, tpu.core_type = #tpu.core_type<tc>, window_params = [{transform_indices = @transform_0, window_bounds = array<i64: 512, 256>}, {transform_indices = @transform_1, window_bounds = array<i64: 256, 128>}, {transform_indices = @transform_2, window_bounds = array<i64: 1, 128>}, {transform_indices = @transform_3, window_bounds = array<i64: 512, 128>}]} {
    %c0_i32 = arith.constant 0 : i32
    %0 = arith.cmpi eq, %arg2, %c0_i32 : i32
    %1 = arith.extui %0 : i1 to i32
    %c0_i32_0 = arith.constant 0 : i32
    %2 = arith.cmpi ne, %1, %c0_i32_0 : i32
    scf.if %2 {
      %cst_10 = arith.constant 0.000000e+00 : f32
      %12 = vector.broadcast %cst_10 : f32 to vector<512x128xf32>
      %c0_11 = arith.constant 0 : index
      %c0_12 = arith.constant 0 : index
      %13 = vector.load %arg7[%c0_11, %c0_12] : memref<512x128xf32, #tpu.memory_space<vmem>>, vector<512x128xf32>
      tpu.vector_store %arg7[%c0_11, %c0_12], %12 {strides = array<i32>} : memref<512x128xf32, #tpu.memory_space<vmem>>, vector<512x128xf32>,
    } else {
    }
    %c0 = arith.constant 0 : index
    %c0_1 = arith.constant 0 : index
    %3 = vector.load %arg7[%c0, %c0_1] : memref<512x128xf32, #tpu.memory_space<vmem>>, vector<512x128xf32>
    %c0_2 = arith.constant 0 : index
    %c0_3 = arith.constant 0 : index
    %4 = vector.load %arg3[%c0_2, %c0_3] : memref<512x256xbf16, #tpu.memory_space<vmem>>, vector<512x256xbf16>
    %c0_4 = arith.constant 0 : index
    %c0_5 = arith.constant 0 : index
    %5 = vector.load %arg4[%c0_4, %c0_5] : memref<256x128xbf16, #tpu.memory_space<vmem>>, vector<256x128xbf16>
    %cst = arith.constant dense<0.000000e+00> : vector<512x128xf32>
    %6 = tpu.matmul %4, %5, %cst {dimension_numbers = #tpu.dot_dimension_numbers<[1], [0], [0], [1], [0, 0, 1, 1], [], []>} : vector<512x256xbf16>, vector<256x128xbf16>, vector<512x128xf32> -> vector<512x128xf32>
    %7 = arith.addf %3, %6 : vector<512x128xf32>
    %c0_6 = arith.constant 0 : index
    %c0_7 = arith.constant 0 : index
    %8 = vector.load %arg7[%c0_6, %c0_7] : memref<512x128xf32, #tpu.memory_space<vmem>>, vector<512x128xf32>
    tpu.vector_store %arg7[%c0_6, %c0_7], %7 {strides = array<i32>} : memref<512x128xf32, #tpu.memory_space<vmem>>, vector<512x128xf32>,
    %c0_i32_8 = arith.constant 0 : i32
    %9 = arith.cmpi eq, %arg2, %c0_i32_8 : i32
    %10 = arith.extui %9 : i1 to i32
    %c0_i32_9 = arith.constant 0 : i32
    %11 = arith.cmpi ne, %10, %c0_i32_9 : i32
    scf.if %11 {
      %c0_10 = arith.constant 0 : index
      %c0_11 = arith.constant 0 : index
      %12 = vector.load %arg7[%c0_10, %c0_11] : memref<512x128xf32, #tpu.memory_space<vmem>>, vector<512x128xf32>
      %c0_12 = arith.constant 0 : index
      %c0_13 = arith.constant 0 : index
      %13 = vector.load %arg5[%c0_12, %c0_13] : memref<1x128xf32, #tpu.memory_space<vmem>>, vector<1x128xf32>
      %14 = vector.broadcast %13 : vector<1x128xf32> to vector<512x128xf32>
      %15 = arith.addf %12, %14 : vector<512x128xf32>
      %cst_14 = arith.constant 0.000000e+00 : f32
      %16 = vector.broadcast %cst_14 : f32 to vector<512x128xf32>
      %17 = arith.maximumf %15, %16 : vector<512x128xf32>
      %18 = arith.truncf %17 : vector<512x128xf32> to vector<512x128xbf16>
      %c0_15 = arith.constant 0 : index
      %c0_16 = arith.constant 0 : index
      %19 = vector.load %arg6[%c0_15, %c0_16] : memref<512x128xbf16, #tpu.memory_space<vmem>>, vector<512x128xbf16>
      tpu.vector_store %arg6[%c0_15, %c0_16], %18 {strides = array<i32>} : memref<512x128xbf16, #tpu.memory_space<vmem>>, vector<512x128xbf16>,
    } else {
    }
    return
  }
  func.func @transform_0(%arg0: i32, %arg1: i32, %arg2: i32) -> (i32, i32) {
    %c0_i32 = arith.constant 0 : i32
    return %arg0, %arg2 : i32, i32
  }
  func.func @transform_1(%arg0: i32, %arg1: i32, %arg2: i32) -> (i32, i32) {
    %c0_i32 = arith.constant 0 : i32
    return %arg2, %arg1 : i32, i32
  }
  func.func @transform_2(%arg0: i32, %arg1: i32, %arg2: i32) -> (i32, i32) {
    %c0_i32 = arith.constant 0 : i32
    %c0_i32_0 = arith.constant 0 : i32
    return %c0_i32, %arg1 : i32, i32
  }
  func.func @transform_3(%arg0: i32, %arg1: i32, %arg2: i32) -> (i32, i32) {
    %c0_i32 = arith.constant 0 : i32
    return %arg0, %arg1 : i32, i32
  }
}

module attributes {stable_mosaic.version = 11 : i64} {
  func.func @_maxpool_kernel(%arg0: i32, %arg1: memref<1x34x16x64xbf16, #tpu.memory_space<vmem>>, %arg2: memref<1x34x16x64xbf16, #tpu.memory_space<vmem>>, %arg3: memref<1x34x16x64xbf16, #tpu.memory_space<vmem>>, %arg4: memref<1x16x16x64xbf16, #tpu.memory_space<vmem>>) attributes {dimension_semantics = [#tpu.dimension_semantics<parallel>], iteration_bounds = array<i64: 2>, scalar_prefetch = 0 : i64, scratch_operands = 0 : i64, tpu.core_type = #tpu.core_type<tc>, window_params = [{transform_indices = @transform_0, window_bounds = array<i64: 1, 34, 16, 64>}, {transform_indices = @transform_1, window_bounds = array<i64: 1, 34, 16, 64>}, {transform_indices = @transform_2, window_bounds = array<i64: 1, 34, 16, 64>}, {transform_indices = @transform_3, window_bounds = array<i64: 1, 16, 16, 64>}]} {
    %c0 = arith.constant 0 : index
    %c0_0 = arith.constant 0 : index
    %c0_1 = arith.constant 0 : index
    %c0_2 = arith.constant 0 : index
    %0 = vector.load %arg1[%c0, %c0_0, %c0_1, %c0_2] : memref<1x34x16x64xbf16, #tpu.memory_space<vmem>>, vector<1x34x16x64xbf16>
    %c0_3 = arith.constant 0 : index
    %c0_4 = arith.constant 0 : index
    %c0_5 = arith.constant 0 : index
    %c0_6 = arith.constant 0 : index
    %1 = vector.load %arg2[%c0_3, %c0_4, %c0_5, %c0_6] : memref<1x34x16x64xbf16, #tpu.memory_space<vmem>>, vector<1x34x16x64xbf16>
    %2 = arith.maximumf %0, %1 : vector<1x34x16x64xbf16>
    %c0_7 = arith.constant 0 : index
    %c0_8 = arith.constant 0 : index
    %c0_9 = arith.constant 0 : index
    %c0_10 = arith.constant 0 : index
    %3 = vector.load %arg3[%c0_7, %c0_8, %c0_9, %c0_10] : memref<1x34x16x64xbf16, #tpu.memory_space<vmem>>, vector<1x34x16x64xbf16>
    %4 = arith.maximumf %2, %3 : vector<1x34x16x64xbf16>
    %5 = vector.shape_cast %4 : vector<1x34x16x64xbf16> to vector<1x17x2x16x64xbf16>
    %6 = vector.extract_strided_slice %5 {offsets = [0, 0, 0, 0, 0], sizes = [1, 17, 1, 16, 64], strides = [1, 1, 1, 1, 1]} : vector<1x17x2x16x64xbf16> to vector<1x17x1x16x64xbf16>
    %7 = vector.shape_cast %6 : vector<1x17x1x16x64xbf16> to vector<1x17x16x64xbf16>
    %8 = vector.extract_strided_slice %5 {offsets = [0, 0, 1, 0, 0], sizes = [1, 17, 1, 16, 64], strides = [1, 1, 1, 1, 1]} : vector<1x17x2x16x64xbf16> to vector<1x17x1x16x64xbf16>
    %9 = vector.shape_cast %8 : vector<1x17x1x16x64xbf16> to vector<1x17x16x64xbf16>
    %10 = vector.extract_strided_slice %7 {offsets = [0, 0, 0, 0], sizes = [1, 16, 16, 64], strides = [1, 1, 1, 1]} : vector<1x17x16x64xbf16> to vector<1x16x16x64xbf16>
    %11 = vector.extract_strided_slice %9 {offsets = [0, 0, 0, 0], sizes = [1, 16, 16, 64], strides = [1, 1, 1, 1]} : vector<1x17x16x64xbf16> to vector<1x16x16x64xbf16>
    %12 = arith.maximumf %10, %11 : vector<1x16x16x64xbf16>
    %13 = vector.extract_strided_slice %7 {offsets = [0, 1, 0, 0], sizes = [1, 16, 16, 64], strides = [1, 1, 1, 1]} : vector<1x17x16x64xbf16> to vector<1x16x16x64xbf16>
    %14 = arith.maximumf %12, %13 : vector<1x16x16x64xbf16>
    %c0_11 = arith.constant 0 : index
    %c0_12 = arith.constant 0 : index
    %c0_13 = arith.constant 0 : index
    %c0_14 = arith.constant 0 : index
    %15 = vector.load %arg4[%c0_11, %c0_12, %c0_13, %c0_14] : memref<1x16x16x64xbf16, #tpu.memory_space<vmem>>, vector<1x16x16x64xbf16>
    tpu.vector_store %arg4[%c0_11, %c0_12, %c0_13, %c0_14], %14 {strides = array<i32>} : memref<1x16x16x64xbf16, #tpu.memory_space<vmem>>, vector<1x16x16x64xbf16>,
    return
  }
  func.func @transform_0(%arg0: i32) -> (i32, i32, i32, i32) {
    %c0_i32 = arith.constant 0 : i32
    %c0_i32_0 = arith.constant 0 : i32
    %c0_i32_1 = arith.constant 0 : i32
    %c0_i32_2 = arith.constant 0 : i32
    return %arg0, %c0_i32, %c0_i32_0, %c0_i32_1 : i32, i32, i32, i32
  }
  func.func @transform_1(%arg0: i32) -> (i32, i32, i32, i32) {
    %c0_i32 = arith.constant 0 : i32
    %c0_i32_0 = arith.constant 0 : i32
    %c0_i32_1 = arith.constant 0 : i32
    %c0_i32_2 = arith.constant 0 : i32
    return %arg0, %c0_i32, %c0_i32_0, %c0_i32_1 : i32, i32, i32, i32
  }
  func.func @transform_2(%arg0: i32) -> (i32, i32, i32, i32) {
    %c0_i32 = arith.constant 0 : i32
    %c0_i32_0 = arith.constant 0 : i32
    %c0_i32_1 = arith.constant 0 : i32
    %c0_i32_2 = arith.constant 0 : i32
    return %arg0, %c0_i32, %c0_i32_0, %c0_i32_1 : i32, i32, i32, i32
  }
  func.func @transform_3(%arg0: i32) -> (i32, i32, i32, i32) {
    %c0_i32 = arith.constant 0 : i32
    %c0_i32_0 = arith.constant 0 : i32
    %c0_i32_1 = arith.constant 0 : i32
    %c0_i32_2 = arith.constant 0 : i32
    return %arg0, %c0_i32, %c0_i32_0, %c0_i32_1 : i32, i32, i32, i32
  }
}

</mosaic_0001>

<bundles_post_ra>
// kernel: stem_forward.2
= control target key start
LH: loop header
LB: loop body
LE: loop exit
PB: predicated region body
PF: predicated region fallthrough
CT: control target
= control target key end

     0   :  { %s2594_s12 = smov 0   ;;  %s2596_s13 = smov 0   ;;  %s2880_s0 = inlined_call_operand.vmem [shape: bf16[2048,256], index: 0, kind: input, shape index: {}]   ;;  %s2881_s1 = inlined_call_operand.vmem [shape: bf16[256,128], index: 1, kind: input, shape index: {}]   ;;  %s2882_s2 = inlined_call_operand.vmem [shape: f32[1,128], index: 2, kind: input, shape index: {}]   ;;  %s2883_s3 = inlined_call_operand.vmem [shape: bf16[2048,128], index: 3, kind: output, shape index: {}]  }
   0x1   :  { %s2598_s14 = smov 0  }
   0x2 LB: > { %s32_s15 = sadd.s32 1, %s2567_s13  ;;  %p1971_p0 = scmp.ge.s32.totalorder %s2571_s14, 1  ;;  %s2571_s14 = sphi %s2598_s14, %s13_s14   ;;  %s2567_s13 = sphi %s2596_s13, %s2885_s13   ;;  %s2563_s12 = sphi %s2594_s12, %s2884_s12  }
   0x3   : > { %p34_p1 = scmp.ge.s32.totalorder %s32_s15, 4  ;;  %p191_p2 = scmp.lt.s32.totalorder %s2571_s14, 5 }
   0x5   : > { %s2887_s15 = smov (%p34_p1, %s32_s15), 0  ;;  %p192_p3 = pnand %p1971_p0, %p191_p2 }
   0x6   : > { %s1972_s18 = sshll.u32 (!%p192_p3), %s2563_s12, 6 }
   0x7   : > { %195 = sbr.rel (%p192_p3) target bundleno = 401 (0x191), region = 32  ;;  %p236_p4 = scmp.lt.s32.totalorder (!%p192_p3), %s1972_s18, 255 }
   0xc   : > { %v2437_v0 = vld [vmem:[%s2881_s1 + $0x38] sm:$0xff]   ;;  %v2573_v1 = vmov 0   ;;  %v2438_v2 = vld [vmem:[%s2881_s1 + $0x30] sm:$0xff]   ;;  %v2439_v3 = vld [vmem:[%s2881_s1 + $0x28] sm:$0xff]   ;;  %s2889_s18 = smov (!%p236_p4, %s1972_s18), 255 }
   0xd   : > { %912 = vmatprep.subr.bf16.mxu0 %v2573_v1  ;;  %2380 = vmatprep.subr.bf16.mxu1 %v2573_v1  ;;  %v2440_v4 = vld [vmem:[%s2881_s1 + $0x20] sm:$0xff]   ;;  %s2124_s25 = sshll.u32 %s2889_s18, 3  ;;  %v2441_v5 = vld [vmem:[%s2881_s1 + $0x18] sm:$0xff]   ;;  %v2442_v7 = vld [vmem:[%s2881_s1 + $0x10] sm:$0xff]   ;;  %s1976_s6 = sshll.u32 %s2889_s18, 2 }
   0xe   : > { %913 = vmatpush1.bf16.msra.mxu0 %v2437_v0  ;;  %2396 = vmatpush1.bf16.msra.mxu1 %v2437_v0  ;;  %s2641_s30 = scalar_lea.vmem %s2880_s0, %s2124_s25  ;;  %v2443_v9 = vld [vmem:[%s2881_s1 + $0x8] sm:$0xff]   ;;  %v2444_v10 = vld [vmem:[%s2881_s1] sm:$0xff]   ;;  %v2445_v11 = vld [vmem:[%s2881_s1 + $0x78] sm:$0xff]   ;;  %s2777_s8 = scalar_lea.vmem %s2883_s3, %s1976_s6 }
   0xf   : > { %914 = vmatprep.subr.bf16.mxu0 %v2573_v1  ;;  %2381 = vmatprep.subr.bf16.mxu1 %v2573_v1  ;;  %v2455_v6 = vld [vmem:[%s2641_s30 + $0x4] ss:$8 sps:$4 sm:$0xff]   ;;  %v2446_v12 = vld [vmem:[%s2881_s1 + $0x70] sm:$0xff]   ;;  %v2449_v15 = vld [vmem:[%s2881_s1 + $0x58] sm:$0xff]  }
  0x10   : > { %v2458_v8 = vld [vmem:[%s2641_s30 + $0x104] ss:$8 sps:$4 sm:$0xff]   ;;  %944 = vmatprep.mubr.bf16.mxu0 %v2455_v6  ;;  %v2450_v16 = vld [vmem:[%s2881_s1 + $0x50] sm:$0xff]   ;;  %v2453_v19 = vld [vmem:[%s2641_s30] ss:$8 sps:$4 sm:$0xff]  }
  0x11   : > { %1072 = vmatprep.mubr.bf16.mxu1 %v2458_v8  ;;  %v2447_v13 = vld [vmem:[%s2881_s1 + $0x68] sm:$0xff]   ;;  %v2448_v14 = vld [vmem:[%s2881_s1 + $0x60] sm:$0xff]   ;;  %v2459_v21 = vld [vmem:[%s2641_s30 + $0x14] ss:$8 sps:$4 sm:$0xff]  }
  0x12   : > { %915 = vmatpush1.bf16.msra.mxu0 %v2438_v2  ;;  %2397 = vmatpush1.bf16.msra.mxu1 %v2438_v2  ;;  %v2451_v17 = vld [vmem:[%s2881_s1 + $0x48] sm:$0xff]   ;;  %v2452_v18 = vld [vmem:[%s2881_s1 + $0x40] sm:$0xff]   ;;  %v2461_v22 = vld [vmem:[%s2641_s30 + $0x114] ss:$8 sps:$4 sm:$0xff]  }
  0x13   : > { %916 = vmatprep.subr.bf16.mxu0 %v2573_v1  ;;  %2382 = vmatprep.subr.bf16.mxu1 %v2573_v1  ;;  %v2456_v20 = vld [vmem:[%s2641_s30 + $0x100] ss:$8 sps:$4 sm:$0xff]   ;;  %v2463_v23 = vld [vmem:[%s2641_s30 + $0x10] ss:$8 sps:$4 sm:$0xff]   ;;  %v2465_v25 = vld [vmem:[%s2641_s30 + $0x24] ss:$8 sps:$4 sm:$0xff]  }
  0x14   : > { %v2464_v24 = vld [vmem:[%s2641_s30 + $0x110] ss:$8 sps:$4 sm:$0xff]   ;;  %v2467_v26 = vld [vmem:[%s2641_s30 + $0x124] ss:$8 sps:$4 sm:$0xff]   ;;  %v2469_v27 = vld [vmem:[%s2641_s30 + $0x20] ss:$8 sps:$4 sm:$0xff]  }
  0x15   : > { %v2470_v28 = vld [vmem:[%s2641_s30 + $0x120] ss:$8 sps:$4 sm:$0xff]   ;;  %v2471_v29 = vld [vmem:[%s2641_s30 + $0x34] ss:$8 sps:$4 sm:$0xff]   ;;  %v2475_v31 = vld [vmem:[%s2641_s30 + $0x30] ss:$8 sps:$4 sm:$0xff]  }
  0x16   : > { %917 = vmatpush1.bf16.msra.mxu0 %v2439_v3  ;;  %2398 = vmatpush1.bf16.msra.mxu1 %v2439_v3  ;;  %v2473_v30 = vld [vmem:[%s2641_s30 + $0x134] ss:$8 sps:$4 sm:$0xff]   ;;  %v2476_v32 = vld [vmem:[%s2641_s30 + $0x130] ss:$8 sps:$4 sm:$0xff]   ;;  %v2477_v33 = vld [vmem:[%s2641_s30 + $0x44] ss:$8 sps:$4 sm:$0xff]  }
  0x17   : > { %918 = vmatprep.subr.bf16.mxu0 %v2573_v1  ;;  %2383 = vmatprep.subr.bf16.mxu1 %v2573_v1  ;;  %v2479_v34 = vld [vmem:[%s2641_s30 + $0x144] ss:$8 sps:$4 sm:$0xff]   ;;  %v2481_v35 = vld [vmem:[%s2641_s30 + $0x40] ss:$8 sps:$4 sm:$0xff]   ;;  %v2483_v37 = vld [vmem:[%s2641_s30 + $0x54] ss:$8 sps:$4 sm:$0xff]  }
  0x18   : > { %v2482_v36 = vld [vmem:[%s2641_s30 + $0x140] ss:$8 sps:$4 sm:$0xff]   ;;  %v2485_v38 = vld [vmem:[%s2641_s30 + $0x154] ss:$8 sps:$4 sm:$0xff]   ;;  %v2487_v39 = vld [vmem:[%s2641_s30 + $0x50] ss:$8 sps:$4 sm:$0xff]  }
  0x19   : > { %v2488_v40 = vld [vmem:[%s2641_s30 + $0x150] ss:$8 sps:$4 sm:$0xff]   ;;  %v2489_v41 = vld [vmem:[%s2641_s30 + $0x64] ss:$8 sps:$4 sm:$0xff]   ;;  %v2493_v43 = vld [vmem:[%s2641_s30 + $0x60] ss:$8 sps:$4 sm:$0xff]  }
  0x1a   : > { %919 = vmatpush1.bf16.msra.mxu0 %v2440_v4  ;;  %2399 = vmatpush1.bf16.msra.mxu1 %v2440_v4  ;;  %v2491_v42 = vld [vmem:[%s2641_s30 + $0x164] ss:$8 sps:$4 sm:$0xff]   ;;  %v2494_v44 = vld [vmem:[%s2641_s30 + $0x160] ss:$8 sps:$4 sm:$0xff]   ;;  %v2495_v45 = vld [vmem:[%s2641_s30 + $0x74] ss:$8 sps:$4 sm:$0xff]  }
  0x1b   : > { %920 = vmatprep.subr.bf16.mxu0 %v2573_v1  ;;  %2384 = vmatprep.subr.bf16.mxu1 %v2573_v1  ;;  %v2497_v46 = vld [vmem:[%s2641_s30 + $0x174] ss:$8 sps:$4 sm:$0xff]   ;;  %v2499_v47 = vld [vmem:[%s2641_s30 + $0x70] ss:$8 sps:$4 sm:$0xff]   ;;  %v2501_v49 = vld [vmem:[%s2641_s30 + $0x84] ss:$8 sps:$4 sm:$0xff]  }
  0x1c   : > { %v2500_v48 = vld [vmem:[%s2641_s30 + $0x170] ss:$8 sps:$4 sm:$0xff]   ;;  %v2503_v50 = vld [vmem:[%s2641_s30 + $0x184] ss:$8 sps:$4 sm:$0xff]   ;;  %v2505_v51 = vld [vmem:[%s2641_s30 + $0x80] ss:$8 sps:$4 sm:$0xff]  }
  0x1d   : > { %v2506_v52 = vld [vmem:[%s2641_s30 + $0x180] ss:$8 sps:$4 sm:$0xff]   ;;  %v2507_v53 = vld [vmem:[%s2641_s30 + $0x94] ss:$8 sps:$4 sm:$0xff]   ;;  %v2511_v55 = vld [vmem:[%s2641_s30 + $0x90] ss:$8 sps:$4 sm:$0xff]  }
  0x1e   : > { %921 = vmatpush1.bf16.msra.mxu0 %v2441_v5  ;;  %2400 = vmatpush1.bf16.msra.mxu1 %v2441_v5  ;;  %v2509_v54 = vld [vmem:[%s2641_s30 + $0x194] ss:$8 sps:$4 sm:$0xff]   ;;  %v2512_v56 = vld [vmem:[%s2641_s30 + $0x190] ss:$8 sps:$4 sm:$0xff]   ;;  %v2513_v57 = vld [vmem:[%s2641_s30 + $0xa4] ss:$8 sps:$4 sm:$0xff]  }
  0x1f   : > { %922 = vmatprep.subr.bf16.mxu0 %v2573_v1  ;;  %2385 = vmatprep.subr.bf16.mxu1 %v2573_v1  ;;  %v2515_v58 = vld [vmem:[%s2641_s30 + $0x1a4] ss:$8 sps:$4 sm:$0xff]   ;;  %v2517_v59 = vld [vmem:[%s2641_s30 + $0xa0] ss:$8 sps:$4 sm:$0xff]   ;;  %v2519_v61 = vld [vmem:[%s2641_s30 + $0xb4] ss:$8 sps:$4 sm:$0xff]  }
  0x20   : > { %v2518_v60 = vld [vmem:[%s2641_s30 + $0x1a0] ss:$8 sps:$4 sm:$0xff]   ;;  %v2521_v62 = vld [vmem:[%s2641_s30 + $0x1b4] ss:$8 sps:$4 sm:$0xff]   ;;  %v2523_v63 = vld [vmem:[%s2641_s30 + $0xb0] ss:$8 sps:$4 sm:$0xff]  }
  0x21   : > { %v2524_v0 = vld [vmem:[%s2641_s30 + $0x1b0] ss:$8 sps:$4 sm:$0xff]   ;;  %v2527_v2 = vld [vmem:[%s2641_s30 + $0x1c4] ss:$8 sps:$4 sm:$0xff]   ;;  %v2529_v3 = vld [vmem:[%s2641_s30 + $0xc0] ss:$8 sps:$4 sm:$0xff]  }
  0x22   : > { %923 = vmatpush1.bf16.msra.mxu0 %v2442_v7  ;;  %2401 = vmatpush1.bf16.msra.mxu1 %v2442_v7  ;;  %v2530_v4 = vld [vmem:[%s2641_s30 + $0x1c0] ss:$8 sps:$4 sm:$0xff]   ;;  %v2531_v5 = vld [vmem:[%s2641_s30 + $0xd4] ss:$8 sps:$4 sm:$0xff]   ;;  %v2535_v7 = vld [vmem:[%s2641_s30 + $0xd0] ss:$8 sps:$4 sm:$0xff]  }
  0x23   : > { %924 = vmatprep.subr.bf16.mxu0 %v2573_v1  ;;  %2386 = vmatprep.subr.bf16.mxu1 %v2573_v1  ;;  %v2533_v6 = vld [vmem:[%s2641_s30 + $0x1d4] ss:$8 sps:$4 sm:$0xff]   ;;  %v2536_v8 = vld [vmem:[%s2641_s30 + $0x1d0] ss:$8 sps:$4 sm:$0xff]  }
  0x26   : > { %925 = vmatpush1.bf16.msra.mxu0 %v2443_v9  ;;  %2402 = vmatpush1.bf16.msra.mxu1 %v2443_v9  ;;  %v2537_v9 = vld [vmem:[%s2641_s30 + $0xe4] ss:$8 sps:$4 sm:$0xff]  }
  0x27   : > { %926 = vmatprep.subr.bf16.mxu0 %v2573_v1  ;;  %2387 = vmatprep.subr.bf16.mxu1 %v2573_v1 }
  0x2a   : > { %927 = vmatpush1.bf16.msra.mxu0 %v2444_v10  ;;  %2403 = vmatpush1.bf16.msra.mxu1 %v2444_v10  ;;  %v2539_v10 = vld [vmem:[%s2641_s30 + $0x1e4] ss:$8 sps:$4 sm:$0xff]  }
  0x2b   : > { %928 = vmatprep.subr.bf16.mxu0 %v2573_v1  ;;  %2388 = vmatprep.subr.bf16.mxu1 %v2573_v1 }
  0x2e   : > { %929 = vmatpush2.bf16.msra.mxu0 %v2445_v11  ;;  %2404 = vmatpush2.bf16.msra.mxu1 %v2445_v11  ;;  %v2541_v11 = vld [vmem:[%s2641_s30 + $0xe0] ss:$8 sps:$4 sm:$0xff]  }
  0x2f   : > { %930 = vmatprep.subr.bf16.mxu0 %v2573_v1  ;;  %2389 = vmatprep.subr.bf16.mxu1 %v2573_v1 }
  0x32   : > { %931 = vmatpush2.bf16.msra.mxu0 %v2446_v12  ;;  %2405 = vmatpush2.bf16.msra.mxu1 %v2446_v12  ;;  %v2542_v12 = vld [vmem:[%s2641_s30 + $0x1e0] ss:$8 sps:$4 sm:$0xff]  }
  0x33   : > { %932 = vmatprep.subr.bf16.mxu0 %v2573_v1  ;;  %2390 = vmatprep.subr.bf16.mxu1 %v2573_v1 }
  0x36   : > { %933 = vmatpush2.bf16.msra.mxu0 %v2447_v13  ;;  %2406 = vmatpush2.bf16.msra.mxu1 %v2447_v13  ;;  %v2543_v13 = vld [vmem:[%s2641_s30 + $0xf4] ss:$8 sps:$4 sm:$0xff]  }
  0x37   : > { %934 = vmatprep.subr.bf16.mxu0 %v2573_v1  ;;  %2391 = vmatprep.subr.bf16.mxu1 %v2573_v1 }
  0x3a   : > { %935 = vmatpush2.bf16.msra.mxu0 %v2448_v14  ;;  %2407 = vmatpush2.bf16.msra.mxu1 %v2448_v14  ;;  %v2545_v14 = vld [vmem:[%s2641_s30 + $0x1f4] ss:$8 sps:$4 sm:$0xff]  }
  0x3b   : > { %936 = vmatprep.subr.bf16.mxu0 %v2573_v1  ;;  %2392 = vmatprep.subr.bf16.mxu1 %v2573_v1 }
  0x3e   : > { %937 = vmatpush2.bf16.msra.mxu0 %v2449_v15  ;;  %2408 = vmatpush2.bf16.msra.mxu1 %v2449_v15  ;;  %v2547_v15 = vld [vmem:[%s2641_s30 + $0xf0] ss:$8 sps:$4 sm:$0xff]  }
  0x3f   : > { %938 = vmatprep.subr.bf16.mxu0 %v2573_v1  ;;  %2393 = vmatprep.subr.bf16.mxu1 %v2573_v1 }
  0x42   : > { %939 = vmatpush2.bf16.msra.mxu0 %v2450_v16  ;;  %2409 = vmatpush2.bf16.msra.mxu1 %v2450_v16  ;;  %v2548_v16 = vld [vmem:[%s2641_s30 + $0x1f0] ss:$8 sps:$4 sm:$0xff]  }
  0x43   : > { %940 = vmatprep.subr.bf16.mxu0 %v2573_v1  ;;  %2394 = vmatprep.subr.bf16.mxu1 %v2573_v1 }
  0x46   : > { %941 = vmatpush2.bf16.msra.mxu0 %v2451_v17  ;;  %2410 = vmatpush2.bf16.msra.mxu1 %v2451_v17 }
  0x47   : > { %942 = vmatprep.subr.bf16.mxu0 %v2573_v1  ;;  %2395 = vmatprep.subr.bf16.mxu1 %v2573_v1  ;;  %v2525_v1 = vld [vmem:[%s2641_s30 + $0xc4] ss:$8 sps:$4 sm:$0xff]  }
  0x4a   : > { %943 = vmatpush2.bf16.msra.mxu0 %v2452_v18  ;;  %2411 = vmatpush2.bf16.msra.mxu1 %v2452_v18  ;;  %v2767_v18 = vld [vmem:[%s2882_s2] ss:$0 sm:$0xff] }
  0x4d   : > { %945 = vmatmul.mubr.bf16.vlgmr.msra.gmra.mxu0 %v2453_v19  ;;  %1073 = vmatmul.mubr.bf16.vlgmr.msra.gmra.mxu1 %v2456_v20 }
  0x4e   : > { %952 = vmatprep.mubr.bf16.mxu0 %v2459_v21  ;;  %1080 = vmatprep.mubr.bf16.mxu1 %v2461_v22 }
  0x55   : > { %953 = vmatmul.mubr.bf16.gmra.mxu0 %v2463_v23  ;;  %1081 = vmatmul.mubr.bf16.gmra.mxu1 %v2464_v24 }
  0x56   : > { %960 = vmatprep.mubr.bf16.mxu0 %v2465_v25  ;;  %1088 = vmatprep.mubr.bf16.mxu1 %v2467_v26 }
  0x5d   : > { %961 = vmatmul.mubr.bf16.gmra.mxu0 %v2469_v27  ;;  %1089 = vmatmul.mubr.bf16.gmra.mxu1 %v2470_v28 }
  0x5e   : > { %968 = vmatprep.mubr.bf16.mxu0 %v2471_v29  ;;  %1096 = vmatprep.mubr.bf16.mxu1 %v2473_v30 }
  0x65   : > { %969 = vmatmul.mubr.bf16.gmra.mxu0 %v2475_v31  ;;  %1097 = vmatmul.mubr.bf16.gmra.mxu1 %v2476_v32 }
  0x66   : > { %976 = vmatprep.mubr.bf16.mxu0 %v2477_v33  ;;  %1104 = vmatprep.mubr.bf16.mxu1 %v2479_v34 }
  0x6d   : > { %977 = vmatmul.mubr.bf16.gmra.mxu0 %v2481_v35  ;;  %1105 = vmatmul.mubr.bf16.gmra.mxu1 %v2482_v36 }
  0x6e   : > { %984 = vmatprep.mubr.bf16.mxu0 %v2483_v37  ;;  %1112 = vmatprep.mubr.bf16.mxu1 %v2485_v38 }
  0x75   : > { %985 = vmatmul.mubr.bf16.gmra.mxu0 %v2487_v39  ;;  %1113 = vmatmul.mubr.bf16.gmra.mxu1 %v2488_v40 }
  0x76   : > { %992 = vmatprep.mubr.bf16.mxu0 %v2489_v41  ;;  %1120 = vmatprep.mubr.bf16.mxu1 %v2491_v42 }
  0x7d   : > { %993 = vmatmul.mubr.bf16.gmra.mxu0 %v2493_v43  ;;  %1121 = vmatmul.mubr.bf16.gmra.mxu1 %v2494_v44 }
  0x7e   : > { %1000 = vmatprep.mubr.bf16.mxu0 %v2495_v45  ;;  %1128 = vmatprep.mubr.bf16.mxu1 %v2497_v46 }
  0x85   : > { %1001 = vmatmul.mubr.bf16.gmra.mxu0 %v2499_v47  ;;  %1129 = vmatmul.mubr.bf16.gmra.mxu1 %v2500_v48 }
  0x86   : > { %1008 = vmatprep.mubr.bf16.mxu0 %v2501_v49  ;;  %1136 = vmatprep.mubr.bf16.mxu1 %v2503_v50 }
  0x8d   : > { %1009 = vmatmul.mubr.bf16.gmra.mxu0 %v2505_v51  ;;  %1137 = vmatmul.mubr.bf16.gmra.mxu1 %v2506_v52 }
  0x8e   : > { %1016 = vmatprep.mubr.bf16.mxu0 %v2507_v53  ;;  %1144 = vmatprep.mubr.bf16.mxu1 %v2509_v54 }
  0x95   : > { %1017 = vmatmul.mubr.bf16.gmra.mxu0 %v2511_v55  ;;  %1145 = vmatmul.mubr.bf16.gmra.mxu1 %v2512_v56 }
  0x96   : > { %1024 = vmatprep.mubr.bf16.mxu0 %v2513_v57  ;;  %1152 = vmatprep.mubr.bf16.mxu1 %v2515_v58 }
  0x9d   : > { %1025 = vmatmul.mubr.bf16.gmra.mxu0 %v2517_v59  ;;  %1153 = vmatmul.mubr.bf16.gmra.mxu1 %v2518_v60 }
  0x9e   : > { %1032 = vmatprep.mubr.bf16.mxu0 %v2519_v61  ;;  %1160 = vmatprep.mubr.bf16.mxu1 %v2521_v62 }
  0xa5   : > { %1033 = vmatmul.mubr.bf16.gmra.mxu0 %v2523_v63  ;;  %1161 = vmatmul.mubr.bf16.gmra.mxu1 %v2524_v0 }
  0xa6   : > { %1040 = vmatprep.mubr.bf16.mxu0 %v2525_v1  ;;  %1168 = vmatprep.mubr.bf16.mxu1 %v2527_v2 }
  0xad   : > { %1041 = vmatmul.mubr.bf16.gmra.mxu0 %v2529_v3  ;;  %1169 = vmatmul.mubr.bf16.gmra.mxu1 %v2530_v4 }
  0xae   : > { %1048 = vmatprep.mubr.bf16.mxu0 %v2531_v5  ;;  %1176 = vmatprep.mubr.bf16.mxu1 %v2533_v6 }
  0xb5   : > { %1049 = vmatmul.mubr.bf16.gmra.mxu0 %v2535_v7  ;;  %1177 = vmatmul.mubr.bf16.gmra.mxu1 %v2536_v8 }
  0xb6   : > { %1056 = vmatprep.mubr.bf16.mxu0 %v2537_v9  ;;  %1184 = vmatprep.mubr.bf16.mxu1 %v2539_v10 }
  0xbd   : > { %1057 = vmatmul.mubr.bf16.gmra.mxu0 %v2541_v11  ;;  %1185 = vmatmul.mubr.bf16.gmra.mxu1 %v2542_v12 }
  0xbe   : > { %1064 = vmatprep.mubr.bf16.mxu0 %v2543_v13  ;;  %1192 = vmatprep.mubr.bf16.mxu1 %v2545_v14 }
  0xc5   : > { %1065 = vmatmul.mubr.bf16.gmra.mxu0 %v2547_v15  ;;  %1193 = vmatmul.mubr.bf16.gmra.mxu1 %v2548_v16 }
 0x10d   : > { %v946_v17 = vpop.f32.mrf.mxu0  ;;  %v1074_v19 = vpop.f32.mrf.mxu1 }
 0x10e   : > { %v1403_v22 = vadd.f32 %v2767_v18, %v946_v17  ;;  %v1435_v23 = vadd.f32 %v2767_v18, %v1074_v19 }
 0x10f   : > { %v948_v20 = vpop.f32.mrf.mxu0  ;;  %v1076_v21 = vpop.f32.mrf.mxu1 }
 0x110   : > { %v1467_v30 = vmax.f32 %v1403_v22, 0.0  ;;  %v1499_v31 = vmax.f32 %v1435_v23, 0.0 }
 0x111   : > { %v949_v24 = vpop.f32.mrf.mxu0  ;;  %v1077_v25 = vpop.f32.mrf.mxu1 }
 0x112   : > { %v1404_v26 = vadd.f32 %v2767_v18, %v949_v24  ;;  %v1436_v27 = vadd.f32 %v2767_v18, %v1077_v25 }
 0x113   : > { %v951_v28 = vpop.f32.mrf.mxu0  ;;  %v1079_v29 = vpop.f32.mrf.mxu1 }
 0x114   : > { %v1468_v32 = vmax.f32 %v1404_v26, 0.0  ;;  %v1500_v33 = vmax.f32 %v1436_v27, 0.0 }
 0x115   : > { %v954_v34 = vpop.f32.mrf.mxu0  ;;  %v1082_v35 = vpop.f32.mrf.mxu1 }
 0x116   : > { %v2192_v36 = vpack.c.bf16 %v1468_v32, %v1467_v30  ;;  %v2272_v37 = vpack.c.bf16 %v1500_v33, %v1499_v31  ;;  %v1405_v40 = vadd.f32 %v2767_v18, %v954_v34  ;;  %v1437_v41 = vadd.f32 %v2767_v18, %v1082_v35 }
 0x117   : > { %v956_v38 = vpop.f32.mrf.mxu0  ;;  %v1084_v39 = vpop.f32.mrf.mxu1 }
 0x118   : > { %2193 = vst [vmem:[%s2777_s8] sm:$0xff] %v2192_v36   ;;  %2364 = vst [vmem:[%s2777_s8 + $0x80] sm:$0xff] %v2272_v37   ;;  %v1469_v48 = vmax.f32 %v1405_v40, 0.0  ;;  %v1501_v49 = vmax.f32 %v1437_v41, 0.0 }
 0x119   : > { %v957_v42 = vpop.f32.mrf.mxu0  ;;  %v1085_v43 = vpop.f32.mrf.mxu1 }
 0x11a   : > { %v1406_v44 = vadd.f32 %v2767_v18, %v957_v42  ;;  %v1438_v45 = vadd.f32 %v2767_v18, %v1085_v43 }
 0x11b   : > { %v959_v46 = vpop.f32.mrf.mxu0  ;;  %v1087_v47 = vpop.f32.mrf.mxu1 }
 0x11c   : > { %v1470_v50 = vmax.f32 %v1406_v44, 0.0  ;;  %v1502_v51 = vmax.f32 %v1438_v45, 0.0 }
 0x11d   : > { %v962_v52 = vpop.f32.mrf.mxu0  ;;  %v1090_v53 = vpop.f32.mrf.mxu1 }
 0x11e   : > { %v2197_v54 = vpack.c.bf16 %v1470_v50, %v1469_v48  ;;  %v2277_v55 = vpack.c.bf16 %v1502_v51, %v1501_v49  ;;  %v1407_v58 = vadd.f32 %v2767_v18, %v962_v52  ;;  %v1439_v59 = vadd.f32 %v2767_v18, %v1090_v53 }
 0x11f   : > { %v964_v56 = vpop.f32.mrf.mxu0  ;;  %v1092_v57 = vpop.f32.mrf.mxu1 }
 0x120   : > { %2349 = vst [vmem:[%s2777_s8 + $0x8] sm:$0xff] %v2197_v54   ;;  %2365 = vst [vmem:[%s2777_s8 + $0x88] sm:$0xff] %v2277_v55   ;;  %v1471_v2 = vmax.f32 %v1407_v58, 0.0  ;;  %v1503_v3 = vmax.f32 %v1439_v59, 0.0 }
 0x121   : > { %v965_v60 = vpop.f32.mrf.mxu0  ;;  %v1093_v61 = vpop.f32.mrf.mxu1 }
 0x122   : > { %v1408_v62 = vadd.f32 %v2767_v18, %v965_v60  ;;  %v1440_v63 = vadd.f32 %v2767_v18, %v1093_v61 }
 0x123   : > { %v967_v0 = vpop.f32.mrf.mxu0  ;;  %v1095_v1 = vpop.f32.mrf.mxu1 }
 0x124   : > { %v1472_v4 = vmax.f32 %v1408_v62, 0.0  ;;  %v1504_v5 = vmax.f32 %v1440_v63, 0.0 }
 0x125   : > { %v970_v6 = vpop.f32.mrf.mxu0  ;;  %v1098_v7 = vpop.f32.mrf.mxu1 }
 0x126   : > { %v2202_v8 = vpack.c.bf16 %v1472_v4, %v1471_v2  ;;  %v2282_v9 = vpack.c.bf16 %v1504_v5, %v1503_v3  ;;  %v1409_v12 = vadd.f32 %v2767_v18, %v970_v6  ;;  %v1441_v13 = vadd.f32 %v2767_v18, %v1098_v7 }
 0x127   : > { %v972_v10 = vpop.f32.mrf.mxu0  ;;  %v1100_v11 = vpop.f32.mrf.mxu1 }
 0x128   : > { %2350 = vst [vmem:[%s2777_s8 + $0x10] sm:$0xff] %v2202_v8   ;;  %2366 = vst [vmem:[%s2777_s8 + $0x90] sm:$0xff] %v2282_v9   ;;  %v1473_v21 = vmax.f32 %v1409_v12, 0.0  ;;  %v1505_v22 = vmax.f32 %v1441_v13, 0.0 }
 0x129   : > { %v973_v14 = vpop.f32.mrf.mxu0  ;;  %v1101_v15 = vpop.f32.mrf.mxu1 }
 0x12a   : > { %v1410_v16 = vadd.f32 %v2767_v18, %v973_v14  ;;  %v1442_v17 = vadd.f32 %v2767_v18, %v1101_v15 }
 0x12b   : > { %v975_v19 = vpop.f32.mrf.mxu0  ;;  %v1103_v20 = vpop.f32.mrf.mxu1 }
 0x12c   : > { %v1474_v23 = vmax.f32 %v1410_v16, 0.0  ;;  %v1506_v24 = vmax.f32 %v1442_v17, 0.0 }
 0x12d   : > { %v978_v25 = vpop.f32.mrf.mxu0  ;;  %v1106_v26 = vpop.f32.mrf.mxu1 }
 0x12e   : > { %v2207_v27 = vpack.c.bf16 %v1474_v23, %v1473_v21  ;;  %v2287_v28 = vpack.c.bf16 %v1506_v24, %v1505_v22  ;;  %v1411_v31 = vadd.f32 %v2767_v18, %v978_v25  ;;  %v1443_v32 = vadd.f32 %v2767_v18, %v1106_v26 }
 0x12f   : > { %v980_v29 = vpop.f32.mrf.mxu0  ;;  %v1108_v30 = vpop.f32.mrf.mxu1 }
 0x130   : > { %2351 = vst [vmem:[%s2777_s8 + $0x18] sm:$0xff] %v2207_v27   ;;  %2367 = vst [vmem:[%s2777_s8 + $0x98] sm:$0xff] %v2287_v28   ;;  %v1475_v39 = vmax.f32 %v1411_v31, 0.0  ;;  %v1507_v40 = vmax.f32 %v1443_v32, 0.0 }
 0x131   : > { %v981_v33 = vpop.f32.mrf.mxu0  ;;  %v1109_v34 = vpop.f32.mrf.mxu1 }
 0x132   : > { %v1412_v35 = vadd.f32 %v2767_v18, %v981_v33  ;;  %v1444_v36 = vadd.f32 %v2767_v18, %v1109_v34 }
 0x133   : > { %v983_v37 = vpop.f32.mrf.mxu0  ;;  %v1111_v38 = vpop.f32.mrf.mxu1 }
 0x134   : > { %v1476_v41 = vmax.f32 %v1412_v35, 0.0  ;;  %v1508_v42 = vmax.f32 %v1444_v36, 0.0 }
 0x135   : > { %v986_v43 = vpop.f32.mrf.mxu0  ;;  %v1114_v44 = vpop.f32.mrf.mxu1 }
 0x136   : > { %v2212_v45 = vpack.c.bf16 %v1476_v41, %v1475_v39  ;;  %v2292_v46 = vpack.c.bf16 %v1508_v42, %v1507_v40  ;;  %v1413_v49 = vadd.f32 %v2767_v18, %v986_v43  ;;  %v1445_v50 = vadd.f32 %v2767_v18, %v1114_v44 }
 0x137   : > { %v988_v47 = vpop.f32.mrf.mxu0  ;;  %v1116_v48 = vpop.f32.mrf.mxu1 }
 0x138   : > { %2352 = vst [vmem:[%s2777_s8 + $0x20] sm:$0xff] %v2212_v45   ;;  %2368 = vst [vmem:[%s2777_s8 + $0xa0] sm:$0xff] %v2292_v46   ;;  %v1477_v57 = vmax.f32 %v1413_v49, 0.0  ;;  %v1509_v58 = vmax.f32 %v1445_v50, 0.0 }
 0x139   : > { %v989_v51 = vpop.f32.mrf.mxu0  ;;  %v1117_v52 = vpop.f32.mrf.mxu1 }
 0x13a   : > { %v1414_v53 = vadd.f32 %v2767_v18, %v989_v51  ;;  %v1446_v54 = vadd.f32 %v2767_v18, %v1117_v52 }
 0x13b   : > { %v991_v55 = vpop.f32.mrf.mxu0  ;;  %v1119_v56 = vpop.f32.mrf.mxu1 }
 0x13c   : > { %v1478_v59 = vmax.f32 %v1414_v53, 0.0  ;;  %v1510_v60 = vmax.f32 %v1446_v54, 0.0 }
 0x13d   : > { %v994_v61 = vpop.f32.mrf.mxu0  ;;  %v1122_v62 = vpop.f32.mrf.mxu1 }
 0x13e   : > { %v2217_v63 = vpack.c.bf16 %v1478_v59, %v1477_v57  ;;  %v2297_v0 = vpack.c.bf16 %v1510_v60, %v1509_v58  ;;  %v1415_v3 = vadd.f32 %v2767_v18, %v994_v61  ;;  %v1447_v4 = vadd.f32 %v2767_v18, %v1122_v62 }
 0x13f   : > { %v996_v1 = vpop.f32.mrf.mxu0  ;;  %v1124_v2 = vpop.f32.mrf.mxu1 }
 0x140   : > { %2353 = vst [vmem:[%s2777_s8 + $0x28] sm:$0xff] %v2217_v63   ;;  %2369 = vst [vmem:[%s2777_s8 + $0xa8] sm:$0xff] %v2297_v0   ;;  %v1479_v11 = vmax.f32 %v1415_v3, 0.0  ;;  %v1511_v12 = vmax.f32 %v1447_v4, 0.0 }
 0x141   : > { %v997_v5 = vpop.f32.mrf.mxu0  ;;  %v1125_v6 = vpop.f32.mrf.mxu1 }
 0x142   : > { %v1416_v7 = vadd.f32 %v2767_v18, %v997_v5  ;;  %v1448_v8 = vadd.f32 %v2767_v18, %v1125_v6 }
 0x143   : > { %v999_v9 = vpop.f32.mrf.mxu0  ;;  %v1127_v10 = vpop.f32.mrf.mxu1 }
 0x144   : > { %v1480_v13 = vmax.f32 %v1416_v7, 0.0  ;;  %v1512_v14 = vmax.f32 %v1448_v8, 0.0 }
 0x145   : > { %v1002_v15 = vpop.f32.mrf.mxu0  ;;  %v1130_v16 = vpop.f32.mrf.mxu1 }
 0x146   : > { %v2222_v17 = vpack.c.bf16 %v1480_v13, %v1479_v11  ;;  %v2302_v19 = vpack.c.bf16 %v1512_v14, %v1511_v12  ;;  %v1417_v22 = vadd.f32 %v2767_v18, %v1002_v15  ;;  %v1449_v23 = vadd.f32 %v2767_v18, %v1130_v16 }
 0x147   : > { %v1004_v20 = vpop.f32.mrf.mxu0  ;;  %v1132_v21 = vpop.f32.mrf.mxu1 }
 0x148   : > { %2354 = vst [vmem:[%s2777_s8 + $0x30] sm:$0xff] %v2222_v17   ;;  %2370 = vst [vmem:[%s2777_s8 + $0xb0] sm:$0xff] %v2302_v19   ;;  %v1481_v30 = vmax.f32 %v1417_v22, 0.0  ;;  %v1513_v31 = vmax.f32 %v1449_v23, 0.0 }
 0x149   : > { %v1005_v24 = vpop.f32.mrf.mxu0  ;;  %v1133_v25 = vpop.f32.mrf.mxu1 }
 0x14a   : > { %v1418_v26 = vadd.f32 %v2767_v18, %v1005_v24  ;;  %v1450_v27 = vadd.f32 %v2767_v18, %v1133_v25 }
 0x14b   : > { %v1007_v28 = vpop.f32.mrf.mxu0  ;;  %v1135_v29 = vpop.f32.mrf.mxu1 }
 0x14c   : > { %v1482_v32 = vmax.f32 %v1418_v26, 0.0  ;;  %v1514_v33 = vmax.f32 %v1450_v27, 0.0 }
 0x14d   : > { %v1010_v34 = vpop.f32.mrf.mxu0  ;;  %v1138_v35 = vpop.f32.mrf.mxu1 }
 0x14e   : > { %v2227_v36 = vpack.c.bf16 %v1482_v32, %v1481_v30  ;;  %v2307_v37 = vpack.c.bf16 %v1514_v33, %v1513_v31  ;;  %v1419_v40 = vadd.f32 %v2767_v18, %v1010_v34  ;;  %v1451_v41 = vadd.f32 %v2767_v18, %v1138_v35 }
 0x14f   : > { %v1012_v38 = vpop.f32.mrf.mxu0  ;;  %v1140_v39 = vpop.f32.mrf.mxu1 }
 0x150   : > { %2355 = vst [vmem:[%s2777_s8 + $0x38] sm:$0xff] %v2227_v36   ;;  %2371 = vst [vmem:[%s2777_s8 + $0xb8] sm:$0xff] %v2307_v37   ;;  %v1483_v48 = vmax.f32 %v1419_v40, 0.0  ;;  %v1515_v49 = vmax.f32 %v1451_v41, 0.0 }
 0x151   : > { %v1013_v42 = vpop.f32.mrf.mxu0  ;;  %v1141_v43 = vpop.f32.mrf.mxu1 }
 0x152   : > { %v1420_v44 = vadd.f32 %v2767_v18, %v1013_v42  ;;  %v1452_v45 = vadd.f32 %v2767_v18, %v1141_v43 }
 0x153   : > { %v1015_v46 = vpop.f32.mrf.mxu0  ;;  %v1143_v47 = vpop.f32.mrf.mxu1 }
 0x154   : > { %v1484_v50 = vmax.f32 %v1420_v44, 0.0  ;;  %v1516_v51 = vmax.f32 %v1452_v45, 0.0 }
 0x155   : > { %v1018_v52 = vpop.f32.mrf.mxu0  ;;  %v1146_v53 = vpop.f32.mrf.mxu1 }
 0x156   : > { %v2232_v54 = vpack.c.bf16 %v1484_v50, %v1483_v48  ;;  %v2312_v55 = vpack.c.bf16 %v1516_v51, %v1515_v49  ;;  %v1421_v58 = vadd.f32 %v2767_v18, %v1018_v52  ;;  %v1453_v59 = vadd.f32 %v2767_v18, %v1146_v53 }
 0x157   : > { %v1020_v56 = vpop.f32.mrf.mxu0  ;;  %v1148_v57 = vpop.f32.mrf.mxu1 }
 0x158   : > { %2356 = vst [vmem:[%s2777_s8 + $0x40] sm:$0xff] %v2232_v54   ;;  %2372 = vst [vmem:[%s2777_s8 + $0xc0] sm:$0xff] %v2312_v55   ;;  %v1485_v2 = vmax.f32 %v1421_v58, 0.0  ;;  %v1517_v3 = vmax.f32 %v1453_v59, 0.0 }
 0x159   : > { %v1021_v60 = vpop.f32.mrf.mxu0  ;;  %v1149_v61 = vpop.f32.mrf.mxu1 }
 0x15a   : > { %v1422_v62 = vadd.f32 %v2767_v18, %v1021_v60  ;;  %v1454_v63 = vadd.f32 %v2767_v18, %v1149_v61 }
 0x15b   : > { %v1023_v0 = vpop.f32.mrf.mxu0  ;;  %v1151_v1 = vpop.f32.mrf.mxu1 }
 0x15c   : > { %v1486_v4 = vmax.f32 %v1422_v62, 0.0  ;;  %v1518_v5 = vmax.f32 %v1454_v63, 0.0 }
 0x15d   : > { %v1026_v6 = vpop.f32.mrf.mxu0  ;;  %v1154_v7 = vpop.f32.mrf.mxu1 }
 0x15e   : > { %v2237_v8 = vpack.c.bf16 %v1486_v4, %v1485_v2  ;;  %v2317_v9 = vpack.c.bf16 %v1518_v5, %v1517_v3  ;;  %v1423_v12 = vadd.f32 %v2767_v18, %v1026_v6  ;;  %v1455_v13 = vadd.f32 %v2767_v18, %v1154_v7 }
 0x15f   : > { %v1028_v10 = vpop.f32.mrf.mxu0  ;;  %v1156_v11 = vpop.f32.mrf.mxu1 }
 0x160   : > { %2357 = vst [vmem:[%s2777_s8 + $0x48] sm:$0xff] %v2237_v8   ;;  %2373 = vst [vmem:[%s2777_s8 + $0xc8] sm:$0xff] %v2317_v9   ;;  %v1487_v21 = vmax.f32 %v1423_v12, 0.0  ;;  %v1519_v22 = vmax.f32 %v1455_v13, 0.0 }
 0x161   : > { %v1029_v14 = vpop.f32.mrf.mxu0  ;;  %v1157_v15 = vpop.f32.mrf.mxu1 }
 0x162   : > { %v1424_v16 = vadd.f32 %v2767_v18, %v1029_v14  ;;  %v1456_v17 = vadd.f32 %v2767_v18, %v1157_v15 }
 0x163   : > { %v1031_v19 = vpop.f32.mrf.mxu0  ;;  %v1159_v20 = vpop.f32.mrf.mxu1 }
 0x164   : > { %v1488_v23 = vmax.f32 %v1424_v16, 0.0  ;;  %v1520_v24 = vmax.f32 %v1456_v17, 0.0 }
 0x165   : > { %v1034_v25 = vpop.f32.mrf.mxu0  ;;  %v1162_v26 = vpop.f32.mrf.mxu1 }
 0x166   : > { %v2242_v27 = vpack.c.bf16 %v1488_v23, %v1487_v21  ;;  %v2322_v28 = vpack.c.bf16 %v1520_v24, %v1519_v22  ;;  %v1425_v31 = vadd.f32 %v2767_v18, %v1034_v25  ;;  %v1457_v32 = vadd.f32 %v2767_v18, %v1162_v26 }
 0x167   : > { %v1036_v29 = vpop.f32.mrf.mxu0  ;;  %v1164_v30 = vpop.f32.mrf.mxu1 }
 0x168   : > { %2358 = vst [vmem:[%s2777_s8 + $0x50] sm:$0xff] %v2242_v27   ;;  %2374 = vst [vmem:[%s2777_s8 + $0xd0] sm:$0xff] %v2322_v28   ;;  %v1489_v39 = vmax.f32 %v1425_v31, 0.0  ;;  %v1521_v40 = vmax.f32 %v1457_v32, 0.0 }
 0x169   : > { %v1037_v33 = vpop.f32.mrf.mxu0  ;;  %v1165_v34 = vpop.f32.mrf.mxu1 }
 0x16a   : > { %v1426_v35 = vadd.f32 %v2767_v18, %v1037_v33  ;;  %v1458_v36 = vadd.f32 %v2767_v18, %v1165_v34 }
 0x16b   : > { %v1039_v37 = vpop.f32.mrf.mxu0  ;;  %v1167_v38 = vpop.f32.mrf.mxu1 }
 0x16c   : > { %v1490_v41 = vmax.f32 %v1426_v35, 0.0  ;;  %v1522_v42 = vmax.f32 %v1458_v36, 0.0 }
 0x16d   : > { %v1042_v43 = vpop.f32.mrf.mxu0  ;;  %v1170_v44 = vpop.f32.mrf.mxu1 }
 0x16e   : > { %v2247_v45 = vpack.c.bf16 %v1490_v41, %v1489_v39  ;;  %v2327_v46 = vpack.c.bf16 %v1522_v42, %v1521_v40  ;;  %v1427_v49 = vadd.f32 %v2767_v18, %v1042_v43  ;;  %v1459_v50 = vadd.f32 %v2767_v18, %v1170_v44 }
 0x16f   : > { %v1044_v47 = vpop.f32.mrf.mxu0  ;;  %v1172_v48 = vpop.f32.mrf.mxu1 }
 0x170   : > { %2359 = vst [vmem:[%s2777_s8 + $0x58] sm:$0xff] %v2247_v45   ;;  %2375 = vst [vmem:[%s2777_s8 + $0xd8] sm:$0xff] %v2327_v46   ;;  %v1491_v57 = vmax.f32 %v1427_v49, 0.0  ;;  %v1523_v58 = vmax.f32 %v1459_v50, 0.0 }
 0x171   : > { %v1045_v51 = vpop.f32.mrf.mxu0  ;;  %v1173_v52 = vpop.f32.mrf.mxu1 }
 0x172   : > { %v1428_v53 = vadd.f32 %v2767_v18, %v1045_v51  ;;  %v1460_v54 = vadd.f32 %v2767_v18, %v1173_v52 }
 0x173   : > { %v1047_v55 = vpop.f32.mrf.mxu0  ;;  %v1175_v56 = vpop.f32.mrf.mxu1 }
 0x174   : > { %v1492_v59 = vmax.f32 %v1428_v53, 0.0  ;;  %v1524_v60 = vmax.f32 %v1460_v54, 0.0 }
 0x175   : > { %v1050_v61 = vpop.f32.mrf.mxu0  ;;  %v1178_v62 = vpop.f32.mrf.mxu1 }
 0x176   : > { %v2252_v63 = vpack.c.bf16 %v1492_v59, %v1491_v57  ;;  %v2332_v0 = vpack.c.bf16 %v1524_v60, %v1523_v58  ;;  %v1429_v3 = vadd.f32 %v2767_v18, %v1050_v61  ;;  %v1461_v4 = vadd.f32 %v2767_v18, %v1178_v62 }
 0x177   : > { %v1052_v1 = vpop.f32.mrf.mxu0  ;;  %v1180_v2 = vpop.f32.mrf.mxu1 }
 0x178   : > { %2360 = vst [vmem:[%s2777_s8 + $0x60] sm:$0xff] %v2252_v63   ;;  %2376 = vst [vmem:[%s2777_s8 + $0xe0] sm:$0xff] %v2332_v0   ;;  %v1493_v11 = vmax.f32 %v1429_v3, 0.0  ;;  %v1525_v12 = vmax.f32 %v1461_v4, 0.0 }
 0x179   : > { %v1053_v5 = vpop.f32.mrf.mxu0  ;;  %v1181_v6 = vpop.f32.mrf.mxu1 }
 0x17a   : > { %v1430_v7 = vadd.f32 %v2767_v18, %v1053_v5  ;;  %v1462_v8 = vadd.f32 %v2767_v18, %v1181_v6 }
 0x17b   : > { %v1055_v9 = vpop.f32.mrf.mxu0  ;;  %v1183_v10 = vpop.f32.mrf.mxu1 }
 0x17c   : > { %v1494_v13 = vmax.f32 %v1430_v7, 0.0  ;;  %v1526_v14 = vmax.f32 %v1462_v8, 0.0 }
 0x17d   : > { %v1058_v15 = vpop.f32.mrf.mxu0  ;;  %v1186_v16 = vpop.f32.mrf.mxu1 }
 0x17e   : > { %v2257_v17 = vpack.c.bf16 %v1494_v13, %v1493_v11  ;;  %v2337_v19 = vpack.c.bf16 %v1526_v14, %v1525_v12  ;;  %v1431_v22 = vadd.f32 %v2767_v18, %v1058_v15  ;;  %v1463_v23 = vadd.f32 %v2767_v18, %v1186_v16 }
 0x17f   : > { %v1060_v20 = vpop.f32.mrf.mxu0  ;;  %v1188_v21 = vpop.f32.mrf.mxu1 }
 0x180   : > { %2361 = vst [vmem:[%s2777_s8 + $0x68] sm:$0xff] %v2257_v17   ;;  %2377 = vst [vmem:[%s2777_s8 + $0xe8] sm:$0xff] %v2337_v19   ;;  %v1495_v30 = vmax.f32 %v1431_v22, 0.0  ;;  %v1527_v31 = vmax.f32 %v1463_v23, 0.0 }
 0x181   : > { %v1061_v24 = vpop.f32.mrf.mxu0  ;;  %v1189_v25 = vpop.f32.mrf.mxu1 }
 0x182   : > { %v1432_v26 = vadd.f32 %v2767_v18, %v1061_v24  ;;  %v1464_v27 = vadd.f32 %v2767_v18, %v1189_v25 }
 0x183   : > { %v1063_v28 = vpop.f32.mrf.mxu0  ;;  %v1191_v29 = vpop.f32.mrf.mxu1 }
 0x184   : > { %v1496_v32 = vmax.f32 %v1432_v26, 0.0  ;;  %v1528_v33 = vmax.f32 %v1464_v27, 0.0 }
 0x185   : > { %v1066_v34 = vpop.f32.mrf.mxu0  ;;  %v1194_v35 = vpop.f32.mrf.mxu1 }
 0x186   : > { %v2262_v36 = vpack.c.bf16 %v1496_v32, %v1495_v30  ;;  %v2342_v37 = vpack.c.bf16 %v1528_v33, %v1527_v31  ;;  %v1433_v40 = vadd.f32 %v2767_v18, %v1066_v34  ;;  %v1465_v41 = vadd.f32 %v2767_v18, %v1194_v35 }
 0x187   : > { %v1068_v38 = vpop.f32.mrf.mxu0  ;;  %v1196_v39 = vpop.f32.mrf.mxu1 }
 0x188   : > { %2362 = vst [vmem:[%s2777_s8 + $0x70] sm:$0xff] %v2262_v36   ;;  %2378 = vst [vmem:[%s2777_s8 + $0xf0] sm:$0xff] %v2342_v37   ;;  %v1497_v48 = vmax.f32 %v1433_v40, 0.0  ;;  %v1529_v49 = vmax.f32 %v1465_v41, 0.0 }
 0x189   : > { %v1069_v42 = vpop.f32.mrf.mxu0  ;;  %v1197_v43 = vpop.f32.mrf.mxu1 }
 0x18a   : > { %v1434_v44 = vadd.f32 %v2767_v18, %v1069_v42  ;;  %v1466_v45 = vadd.f32 %v2767_v18, %v1197_v43 }
 0x18b   : > { %v1071_v46 = vpop.f32.mrf.mxu0  ;;  %v1199_v47 = vpop.f32.mrf.mxu1 }
 0x18c   : > { %v1498_v50 = vmax.f32 %v1434_v44, 0.0  ;;  %v1530_v51 = vmax.f32 %v1466_v45, 0.0 }
 0x18e   : > { %v2267_v52 = vpack.c.bf16 %v1498_v50, %v1497_v48  ;;  %v2347_v53 = vpack.c.bf16 %v1530_v51, %v1529_v49 }
 0x190   : > { %2363 = vst [vmem:[%s2777_s8 + $0x78] sm:$0xff] %v2267_v52   ;;  %2379 = vst [vmem:[%s2777_s8 + $0xf8] sm:$0xff] %v2347_v53  }
 0x191 PF: > { %s13_s14 = sadd.s32 1, %s2571_s14   ;;  %s2884_s12 = smov %s2567_s13 }
 0x192   : > { %p10_p5 = scmp.ge.s32.totalorder %s13_s14, 6   ;;  %s2885_s13 = smov %s2887_s15 }
 0x194   :  { %12 = sbr.rel (!%p10_p5) target bundleno = 2 (0x2), region = 76 }

// kernel: stem_forward.3
= control target key start
LH: loop header
LB: loop body
LE: loop exit
PB: predicated region body
PF: predicated region fallthrough
CT: control target
= control target key end

     0   :  { %8 = vsyncpa [#allocation3], 0  ;;  %s1263_s0 = inlined_call_operand.vmem [shape: bf16[2,34,16,64], index: 0, kind: input, shape index: {}]   ;;  %s1264_s1 = inlined_call_operand.vmem [shape: bf16[2,34,16,64], index: 1, kind: input, shape index: {}]   ;;  %s1265_s2 = inlined_call_operand.vmem [shape: bf16[2,34,16,64], index: 2, kind: input, shape index: {}]   ;;  %s1266_s3 = inlined_call_operand.hbm [shape: bf16[2,16,16,64], index: 3, kind: output, shape index: {}]  }
   0x1   :  { %10 = vsyncpa [#allocation3 + $0x1], 0  ;;  %s877_s12 = smov 0   ;;  %s879_s13 = smov 0  }
   0x2   :  { %s881_s14 = smov 0   ;;  %s883_s15 = smov 0  }
   0x3 LB: > { %s898_s16 = sadd.s32 4294967295, %s852_s15   ;;  %s736_s17 = sadd.s32 4294967294, %s852_s15   ;;  %s852_s15 = sphi %s883_s15, %s1272_s15   ;;  %s848_s14 = sphi %s881_s14, %s1271_s14   ;;  %s844_s13 = sphi %s879_s13, %s1270_s13   ;;  %s840_s12 = sphi %s877_s12, %s1269_s12  }
   0x4   : > { %s902_s18 = sadd.s32 1, %s852_s15   ;;  %s101_s19 = sadd.s32 1, %s848_s14 }
   0x5   : > { %s98_s20 = ssub.s32 %s852_s15, %s902_s18  ;;  %p111_p0 = scmp.ne.s32.totalorder %s848_s14, %s844_s13 }
   0x6   : > { %p99_p1 = scmp.eq.s32.totalorder %s98_s20, 0  ;;  %p112_p2 = scmp.eq.s32.totalorder %s898_s16, 1 }
   0x7   : > { %p117_p3 = scmp.ne.s32.totalorder %s844_s13, %s840_s12  ;;  %p118_p4 = scmp.eq.s32.totalorder %s736_s17, 1 }
   0x8   : > { %s913_s21 = scalar_select %p99_p1, %s848_s14, %s101_s19  }
   0x9   : > { %p915_p5 = por %p112_p2, %p111_p0  ;;  %p919_p6 = por %p118_p4, %p117_p3 }
   0xa   : > { %p739_p7 = scmp.ge.s32.totalorder %s852_s15, 1  ;;  %p160_p8 = scmp.lt.s32.totalorder %s852_s15, 3 }
   0xc   : > { %p161_p9 = pnand %p739_p7, %p160_p8 }
   0xd   : > { %s191_s24 = sand.u32 (!%p161_p9), 1, %s844_s13   ;;  %p194_p10 = scmp.lt.s32.totalorder (!%p161_p9), %s898_s16, 1 }
   0xe   : > { %164 = sbr.rel (%p161_p9) target bundleno = 121 (0x79), region = 32  ;;  %s929_s25 = sshll.u32 (!%p161_p9), %s191_s24, 7 }
   0xf   : > { %s978_s10 = scalar_lea.vmem (!%p161_p9), [#allocation2], %s929_s25  ;;  %s749_s11 = sshll.u32 (!%p161_p9), %s898_s16, 11 }
  0x10   : > { %s650_s17 = sshll.u32 (!%p161_p9), %s978_s10, 4  ;;  %s1213_s25 = scalar_lea.hbm (!%p161_p9), %s1266_s3, %s749_s11  ;;  %s1215_s17 = int_to_ptr.vmem [resolvable:$true] %s650_s17 }
  0x13   : > { %s195_s26 = scalar_select %p194_p10, %s898_s16, 1  ;;  %vm603_vm0 = vcmask 519168  }
  0x14   : > { %s1223_s16 = scalar_lea.sflag [#allocation3], %s191_s24 }
  0x15   : > { %s750_s27 = smul.u32 272, %s195_s26  ;;  %s792_s26 = scalar_lea.vmem %s1215_s17, 2048 }
  0x16   : > { %p793_p11 = scmp.ne.s32.totalorder %s1215_s17, %s792_s26 }
  0x17   : > { %s935_s30 = scalar_lea.vmem %s1263_s0, %s750_s27  ;;  %s940_s6 = scalar_lea.vmem %s1264_s1, %s750_s27 }
  0x18   : > { %s945_s9 = scalar_lea.vmem %s1265_s2, %s750_s27  ;;  %v209_v0 = vld [vmem:[%s935_s30] sm:$0xf]  ;;  %v211_v1 = vld [vmem:[%s935_s30 + $0x8] sm:$0xf]  ;;  %v213_v2 = vld [vmem:[%s935_s30 + $0x10] sm:$0xf]  ;;  %p794_p12 = pnand %p793_p11, %p915_p5 }
  0x19   : > { %v275_v3 = vld [vmem:[%s940_s6] sm:$0xf]  ;;  %v277_v4 = vld [vmem:[%s940_s6 + $0x8] sm:$0xf]  ;;  %v279_v5 = vld [vmem:[%s940_s6 + $0x10] sm:$0xf] }
  0x1a   : > { %v341_v6 = vmax.bf16 %v275_v3, %v209_v0  ;;  %v343_v7 = vmax.bf16 %v277_v4, %v211_v1  ;;  %v345_v8 = vmax.bf16 %v279_v5, %v213_v2  ;;  %v407_v9 = vld [vmem:[%s945_s9] sm:$0xf]  ;;  %v409_v10 = vld [vmem:[%s945_s9 + $0x8] sm:$0xf]  ;;  %v411_v11 = vld [vmem:[%s945_s9 + $0x10] sm:$0xf]  ;;  %p795_p13 = pneg %p794_p12 }
  0x1b   : > { %v210_v12 = vld [vmem:[%s935_s30 + $0x4] sm:$0xf]  ;;  %v212_v13 = vld [vmem:[%s935_s30 + $0xc] sm:$0xf]  ;;  %v214_v14 = vld [vmem:[%s935_s30 + $0x14] sm:$0xf] }
  0x1c   : > { %v473_v15 = vmax.bf16 %v407_v9, %v341_v6  ;;  %v475_v16 = vmax.bf16 %v409_v10, %v343_v7  ;;  %v276_v17 = vld [vmem:[%s940_s6 + $0x4] sm:$0xf]  ;;  %v278_v18 = vld [vmem:[%s940_s6 + $0xc] sm:$0xf]  ;;  %v280_v19 = vld [vmem:[%s940_s6 + $0x14] sm:$0xf]  ;;  %v477_v26 = vmax.bf16 %v411_v11, %v345_v8 }
  0x1d   : > { %v342_v20 = vmax.bf16 %v276_v17, %v210_v12  ;;  %v344_v21 = vmax.bf16 %v278_v18, %v212_v13  ;;  %v346_v22 = vmax.bf16 %v280_v19, %v214_v14  ;;  %v408_v23 = vld [vmem:[%s945_s9 + $0x4] sm:$0xf]  ;;  %v410_v24 = vld [vmem:[%s945_s9 + $0xc] sm:$0xf]  ;;  %v412_v25 = vld [vmem:[%s945_s9 + $0x14] sm:$0xf] }
  0x1e   : > { %v539_v27 = vmax.bf16 %v475_v16, %v473_v15  ;;  %v215_v28 = vld [vmem:[%s935_s30 + $0x18] sm:$0xf]  ;;  %v217_v29 = vld [vmem:[%s935_s30 + $0x20] sm:$0xf]  ;;  %v216_v39 = vld [vmem:[%s935_s30 + $0x1c] sm:$0xf] }
  0x1f   : > { %v281_v30 = vld [vmem:[%s940_s6 + $0x18] sm:$0xf]  ;;  %v474_v31 = vmax.bf16 %v408_v23, %v342_v20  ;;  %v476_v32 = vmax.bf16 %v410_v24, %v344_v21  ;;  %v283_v33 = vld [vmem:[%s940_s6 + $0x20] sm:$0xf]  ;;  %v218_v40 = vld [vmem:[%s935_s30 + $0x24] sm:$0xf]  ;;  %v478_v42 = vmax.bf16 %v412_v25, %v346_v22 }
  0x20   : > { %v347_v34 = vmax.bf16 %v281_v30, %v215_v28  ;;  %v413_v35 = vld [vmem:[%s945_s9 + $0x18] sm:$0xf]  ;;  %v415_v36 = vld [vmem:[%s945_s9 + $0x20] sm:$0xf]  ;;  %v571_v37 = vmax.bf16 %v539_v27, %v477_v26  ;;  %v349_v38 = vmax.bf16 %v283_v33, %v217_v29  ;;  %v282_v41 = vld [vmem:[%s940_s6 + $0x1c] sm:$0xf] }
  0x21   : > { %v540_v43 = vmax.bf16 %v476_v32, %v474_v31  ;;  %v284_v45 = vld [vmem:[%s940_s6 + $0x24] sm:$0xf]  ;;  %v348_v46 = vmax.bf16 %v282_v41, %v216_v39  ;;  %v414_v47 = vld [vmem:[%s945_s9 + $0x1c] sm:$0xf]  ;;  %v219_v51 = vld [vmem:[%s935_s30 + $0x28] sm:$0xf] }
  0x22   : > { %v479_v44 = vmax.bf16 %v413_v35, %v347_v34  ;;  %v416_v48 = vld [vmem:[%s945_s9 + $0x24] sm:$0xf]  ;;  %604 = vst.msk [vmem:[%s978_s10] sm:$0xf] %vm603_vm0, %v571_v37  ;;  %v481_v49 = vmax.bf16 %v415_v36, %v349_v38  ;;  %v350_v50 = vmax.bf16 %v284_v45, %v218_v40  ;;  %v221_v52 = vld [vmem:[%s935_s30 + $0x30] sm:$0xf] }
  0x23   : > { %v285_v53 = vld [vmem:[%s940_s6 + $0x28] sm:$0xf]  ;;  %v572_v54 = vmax.bf16 %v540_v43, %v478_v42  ;;  %v480_v56 = vmax.bf16 %v414_v47, %v348_v46  ;;  %v287_v57 = vld [vmem:[%s940_s6 + $0x30] sm:$0xf]  ;;  %v220_v63 = vld [vmem:[%s935_s30 + $0x2c] sm:$0xf] }
  0x24   : > { %v541_v55 = vmax.bf16 %v479_v44, %v477_v26  ;;  %v351_v58 = vmax.bf16 %v285_v53, %v219_v51  ;;  %v417_v59 = vld [vmem:[%s945_s9 + $0x28] sm:$0xf]  ;;  %v419_v60 = vld [vmem:[%s945_s9 + $0x30] sm:$0xf]  ;;  %v482_v61 = vmax.bf16 %v416_v48, %v350_v50  ;;  %v353_v62 = vmax.bf16 %v287_v57, %v221_v52  ;;  %v222_v0 = vld [vmem:[%s935_s30 + $0x34] sm:$0xf] }
  0x25   : > { %v286_v1 = vld [vmem:[%s940_s6 + $0x2c] sm:$0xf]  ;;  %605 = vst.msk [vmem:[%s978_s10 + $0x4] sm:$0xf] %vm603_vm0, %v572_v54  ;;  %v542_v3 = vmax.bf16 %v480_v56, %v478_v42  ;;  %v288_v5 = vld [vmem:[%s940_s6 + $0x34] sm:$0xf] }
  0x26   : > { %v573_v2 = vmax.bf16 %v541_v55, %v481_v49  ;;  %v483_v4 = vmax.bf16 %v417_v59, %v351_v58  ;;  %v352_v6 = vmax.bf16 %v286_v1, %v220_v63  ;;  %v418_v7 = vld [vmem:[%s945_s9 + $0x2c] sm:$0xf]  ;;  %v420_v8 = vld [vmem:[%s945_s9 + $0x34] sm:$0xf]  ;;  %v485_v9 = vmax.bf16 %v419_v60, %v353_v62  ;;  %v223_v11 = vld [vmem:[%s935_s30 + $0x38] sm:$0xf] }
  0x27   : > { %v354_v10 = vmax.bf16 %v288_v5, %v222_v0  ;;  %v225_v12 = vld [vmem:[%s935_s30 + $0x40] sm:$0xf]  ;;  %v289_v13 = vld [vmem:[%s940_s6 + $0x38] sm:$0xf]  ;;  %v574_v14 = vmax.bf16 %v542_v3, %v482_v61  ;;  %v224_v23 = vld [vmem:[%s935_s30 + $0x3c] sm:$0xf] }
  0x28   : > { %606 = vst.msk [vmem:[%s978_s10 + $0x8] sm:$0xf] %vm603_vm0, %v573_v2  ;;  %v543_v15 = vmax.bf16 %v483_v4, %v481_v49  ;;  %v484_v16 = vmax.bf16 %v418_v7, %v352_v6  ;;  %v291_v17 = vld [vmem:[%s940_s6 + $0x40] sm:$0xf]  ;;  %v355_v18 = vmax.bf16 %v289_v13, %v223_v11  ;;  %v421_v19 = vld [vmem:[%s945_s9 + $0x38] sm:$0xf] }
  0x29   : > { %v423_v20 = vld [vmem:[%s945_s9 + $0x40] sm:$0xf]  ;;  %v486_v21 = vmax.bf16 %v420_v8, %v354_v10  ;;  %v357_v22 = vmax.bf16 %v291_v17, %v225_v12  ;;  %v226_v24 = vld [vmem:[%s935_s30 + $0x44] sm:$0xf]  ;;  %v290_v25 = vld [vmem:[%s940_s6 + $0x3c] sm:$0xf] }
  0x2a   : > { %607 = vst.msk [vmem:[%s978_s10 + $0xc] sm:$0xf] %vm603_vm0, %v574_v14  ;;  %v575_v26 = vmax.bf16 %v543_v15, %v485_v9  ;;  %v544_v27 = vmax.bf16 %v484_v16, %v482_v61  ;;  %v487_v28 = vmax.bf16 %v421_v19, %v355_v18  ;;  %v292_v29 = vld [vmem:[%s940_s6 + $0x44] sm:$0xf]  ;;  %v356_v30 = vmax.bf16 %v290_v25, %v224_v23  ;;  %v422_v31 = vld [vmem:[%s945_s9 + $0x3c] sm:$0xf] }
  0x2b   : > { %v424_v32 = vld [vmem:[%s945_s9 + $0x44] sm:$0xf]  ;;  %v489_v33 = vmax.bf16 %v423_v20, %v357_v22  ;;  %v358_v34 = vmax.bf16 %v292_v29, %v226_v24  ;;  %v227_v35 = vld [vmem:[%s935_s30 + $0x48] sm:$0xf]  ;;  %v229_v36 = vld [vmem:[%s935_s30 + $0x50] sm:$0xf] }
  0x2c   : > { %v293_v37 = vld [vmem:[%s940_s6 + $0x48] sm:$0xf]  ;;  %608 = vst.msk [vmem:[%s978_s10 + $0x10] sm:$0xf] %vm603_vm0, %v575_v26  ;;  %v576_v38 = vmax.bf16 %v544_v27, %v486_v21  ;;  %v545_v39 = vmax.bf16 %v487_v28, %v485_v9  ;;  %v488_v40 = vmax.bf16 %v422_v31, %v356_v30  ;;  %v295_v41 = vld [vmem:[%s940_s6 + $0x50] sm:$0xf] }
  0x2d   : > { %v359_v42 = vmax.bf16 %v293_v37, %v227_v35  ;;  %v425_v43 = vld [vmem:[%s945_s9 + $0x48] sm:$0xf]  ;;  %v427_v44 = vld [vmem:[%s945_s9 + $0x50] sm:$0xf]  ;;  %v490_v45 = vmax.bf16 %v424_v32, %v358_v34  ;;  %v361_v46 = vmax.bf16 %v295_v41, %v229_v36  ;;  %v228_v47 = vld [vmem:[%s935_s30 + $0x4c] sm:$0xf] }
  0x2e   : > { %v230_v48 = vld [vmem:[%s935_s30 + $0x54] sm:$0xf]  ;;  %v294_v49 = vld [vmem:[%s940_s6 + $0x4c] sm:$0xf]  ;;  %609 = vst.msk [vmem:[%s978_s10 + $0x14] sm:$0xf] %vm603_vm0, %v576_v38  ;;  %v577_v50 = vmax.bf16 %v545_v39, %v489_v33  ;;  %v546_v51 = vmax.bf16 %v488_v40, %v486_v21 }
  0x2f   : > { %v491_v52 = vmax.bf16 %v425_v43, %v359_v42  ;;  %v296_v53 = vld [vmem:[%s940_s6 + $0x54] sm:$0xf]  ;;  %v360_v54 = vmax.bf16 %v294_v49, %v228_v47  ;;  %v426_v55 = vld [vmem:[%s945_s9 + $0x4c] sm:$0xf]  ;;  %v493_v57 = vmax.bf16 %v427_v44, %v361_v46  ;;  %v231_v59 = vld [vmem:[%s935_s30 + $0x58] sm:$0xf] }
  0x30   : > { %v428_v56 = vld [vmem:[%s945_s9 + $0x54] sm:$0xf]  ;;  %v362_v58 = vmax.bf16 %v296_v53, %v230_v48  ;;  %v233_v60 = vld [vmem:[%s935_s30 + $0x60] sm:$0xf]  ;;  %v297_v61 = vld [vmem:[%s940_s6 + $0x58] sm:$0xf]  ;;  %v578_v62 = vmax.bf16 %v546_v51, %v490_v45 }
  0x31   : > { %610 = vst.msk [vmem:[%s978_s10 + $0x18] sm:$0xf] %vm603_vm0, %v577_v50  ;;  %v547_v63 = vmax.bf16 %v491_v52, %v489_v33  ;;  %v492_v0 = vmax.bf16 %v426_v55, %v360_v54  ;;  %v299_v1 = vld [vmem:[%s940_s6 + $0x60] sm:$0xf]  ;;  %v363_v2 = vmax.bf16 %v297_v61, %v231_v59  ;;  %v429_v3 = vld [vmem:[%s945_s9 + $0x58] sm:$0xf] }
  0x32   : > { %v431_v4 = vld [vmem:[%s945_s9 + $0x60] sm:$0xf]  ;;  %v494_v5 = vmax.bf16 %v428_v56, %v362_v58  ;;  %v365_v6 = vmax.bf16 %v299_v1, %v233_v60  ;;  %v232_v7 = vld [vmem:[%s935_s30 + $0x5c] sm:$0xf]  ;;  %v234_v8 = vld [vmem:[%s935_s30 + $0x64] sm:$0xf] }
  0x33   : > { %v298_v9 = vld [vmem:[%s940_s6 + $0x5c] sm:$0xf]  ;;  %611 = vst.msk [vmem:[%s978_s10 + $0x1c] sm:$0xf] %vm603_vm0, %v578_v62  ;;  %v579_v10 = vmax.bf16 %v547_v63, %v493_v57  ;;  %v548_v11 = vmax.bf16 %v492_v0, %v490_v45  ;;  %v495_v12 = vmax.bf16 %v429_v3, %v363_v2  ;;  %v300_v13 = vld [vmem:[%s940_s6 + $0x64] sm:$0xf] }
  0x34   : > { %v364_v14 = vmax.bf16 %v298_v9, %v232_v7  ;;  %v430_v15 = vld [vmem:[%s945_s9 + $0x5c] sm:$0xf]  ;;  %v432_v16 = vld [vmem:[%s945_s9 + $0x64] sm:$0xf]  ;;  %v497_v17 = vmax.bf16 %v431_v4, %v365_v6  ;;  %v366_v18 = vmax.bf16 %v300_v13, %v234_v8  ;;  %v235_v19 = vld [vmem:[%s935_s30 + $0x68] sm:$0xf] }
  0x35   : > { %v237_v20 = vld [vmem:[%s935_s30 + $0x70] sm:$0xf]  ;;  %v301_v21 = vld [vmem:[%s940_s6 + $0x68] sm:$0xf]  ;;  %612 = vst.msk [vmem:[%s978_s10 + $0x20] sm:$0xf] %vm603_vm0, %v579_v10  ;;  %v580_v22 = vmax.bf16 %v548_v11, %v494_v5  ;;  %v549_v23 = vmax.bf16 %v495_v12, %v493_v57 }
  0x36   : > { %v496_v24 = vmax.bf16 %v430_v15, %v364_v14  ;;  %v303_v25 = vld [vmem:[%s940_s6 + $0x70] sm:$0xf]  ;;  %v367_v26 = vmax.bf16 %v301_v21, %v235_v19  ;;  %v433_v27 = vld [vmem:[%s945_s9 + $0x68] sm:$0xf]  ;;  %v498_v29 = vmax.bf16 %v432_v16, %v366_v18  ;;  %v236_v31 = vld [vmem:[%s935_s30 + $0x6c] sm:$0xf] }
  0x37   : > { %v435_v28 = vld [vmem:[%s945_s9 + $0x70] sm:$0xf]  ;;  %v369_v30 = vmax.bf16 %v303_v25, %v237_v20  ;;  %v238_v32 = vld [vmem:[%s935_s30 + $0x74] sm:$0xf]  ;;  %v302_v33 = vld [vmem:[%s940_s6 + $0x6c] sm:$0xf]  ;;  %v581_v34 = vmax.bf16 %v549_v23, %v497_v17 }
  0x38   : > { %613 = vst.msk [vmem:[%s978_s10 + $0x24] sm:$0xf] %vm603_vm0, %v580_v22  ;;  %v550_v35 = vmax.bf16 %v496_v24, %v494_v5  ;;  %v499_v36 = vmax.bf16 %v433_v27, %v367_v26  ;;  %v304_v37 = vld [vmem:[%s940_s6 + $0x74] sm:$0xf]  ;;  %v368_v38 = vmax.bf16 %v302_v33, %v236_v31  ;;  %v434_v39 = vld [vmem:[%s945_s9 + $0x6c] sm:$0xf] }
  0x39   : > { %v436_v40 = vld [vmem:[%s945_s9 + $0x74] sm:$0xf]  ;;  %v501_v41 = vmax.bf16 %v435_v28, %v369_v30  ;;  %v370_v42 = vmax.bf16 %v304_v37, %v238_v32  ;;  %v239_v43 = vld [vmem:[%s935_s30 + $0x78] sm:$0xf]  ;;  %v241_v44 = vld [vmem:[%s935_s30 + $0x80] sm:$0xf] }
  0x3a   : > { %v305_v45 = vld [vmem:[%s940_s6 + $0x78] sm:$0xf]  ;;  %614 = vst.msk [vmem:[%s978_s10 + $0x28] sm:$0xf] %vm603_vm0, %v581_v34  ;;  %v582_v46 = vmax.bf16 %v550_v35, %v498_v29  ;;  %v551_v47 = vmax.bf16 %v499_v36, %v497_v17  ;;  %v500_v48 = vmax.bf16 %v434_v39, %v368_v38  ;;  %v307_v49 = vld [vmem:[%s940_s6 + $0x80] sm:$0xf] }
  0x3b   : > { %v371_v50 = vmax.bf16 %v305_v45, %v239_v43  ;;  %v437_v51 = vld [vmem:[%s945_s9 + $0x78] sm:$0xf]  ;;  %v439_v52 = vld [vmem:[%s945_s9 + $0x80] sm:$0xf]  ;;  %v502_v53 = vmax.bf16 %v436_v40, %v370_v42  ;;  %v373_v54 = vmax.bf16 %v307_v49, %v241_v44  ;;  %v240_v55 = vld [vmem:[%s935_s30 + $0x7c] sm:$0xf] }
  0x3c   : > { %v242_v56 = vld [vmem:[%s935_s30 + $0x84] sm:$0xf]  ;;  %v306_v57 = vld [vmem:[%s940_s6 + $0x7c] sm:$0xf]  ;;  %615 = vst.msk [vmem:[%s978_s10 + $0x2c] sm:$0xf] %vm603_vm0, %v582_v46  ;;  %v583_v58 = vmax.bf16 %v551_v47, %v501_v41  ;;  %v552_v59 = vmax.bf16 %v500_v48, %v498_v29 }
  0x3d   : > { %v503_v60 = vmax.bf16 %v437_v51, %v371_v50  ;;  %v308_v61 = vld [vmem:[%s940_s6 + $0x84] sm:$0xf]  ;;  %v372_v62 = vmax.bf16 %v306_v57, %v240_v55  ;;  %v438_v63 = vld [vmem:[%s945_s9 + $0x7c] sm:$0xf]  ;;  %v505_v1 = vmax.bf16 %v439_v52, %v373_v54  ;;  %v243_v3 = vld [vmem:[%s935_s30 + $0x88] sm:$0xf] }
  0x3e   : > { %v440_v0 = vld [vmem:[%s945_s9 + $0x84] sm:$0xf]  ;;  %v374_v2 = vmax.bf16 %v308_v61, %v242_v56  ;;  %v245_v4 = vld [vmem:[%s935_s30 + $0x90] sm:$0xf]  ;;  %v309_v5 = vld [vmem:[%s940_s6 + $0x88] sm:$0xf]  ;;  %v584_v6 = vmax.bf16 %v552_v59, %v502_v53 }
  0x3f   : > { %616 = vst.msk [vmem:[%s978_s10 + $0x30] sm:$0xf] %vm603_vm0, %v583_v58  ;;  %v553_v7 = vmax.bf16 %v503_v60, %v501_v41  ;;  %v504_v8 = vmax.bf16 %v438_v63, %v372_v62  ;;  %v311_v9 = vld [vmem:[%s940_s6 + $0x90] sm:$0xf]  ;;  %v375_v10 = vmax.bf16 %v309_v5, %v243_v3  ;;  %v441_v11 = vld [vmem:[%s945_s9 + $0x88] sm:$0xf] }
  0x40   : > { %v443_v12 = vld [vmem:[%s945_s9 + $0x90] sm:$0xf]  ;;  %v506_v13 = vmax.bf16 %v440_v0, %v374_v2  ;;  %v377_v14 = vmax.bf16 %v311_v9, %v245_v4  ;;  %v244_v15 = vld [vmem:[%s935_s30 + $0x8c] sm:$0xf]  ;;  %v246_v16 = vld [vmem:[%s935_s30 + $0x94] sm:$0xf] }
  0x41   : > { %v310_v17 = vld [vmem:[%s940_s6 + $0x8c] sm:$0xf]  ;;  %617 = vst.msk [vmem:[%s978_s10 + $0x34] sm:$0xf] %vm603_vm0, %v584_v6  ;;  %v585_v18 = vmax.bf16 %v553_v7, %v505_v1  ;;  %v554_v19 = vmax.bf16 %v504_v8, %v502_v53  ;;  %v507_v20 = vmax.bf16 %v441_v11, %v375_v10  ;;  %v312_v21 = vld [vmem:[%s940_s6 + $0x94] sm:$0xf] }
  0x42   : > { %v376_v22 = vmax.bf16 %v310_v17, %v244_v15  ;;  %v442_v23 = vld [vmem:[%s945_s9 + $0x8c] sm:$0xf]  ;;  %v444_v24 = vld [vmem:[%s945_s9 + $0x94] sm:$0xf]  ;;  %v509_v25 = vmax.bf16 %v443_v12, %v377_v14  ;;  %v378_v26 = vmax.bf16 %v312_v21, %v246_v16  ;;  %v247_v27 = vld [vmem:[%s935_s30 + $0x98] sm:$0xf] }
  0x43   : > { %v249_v28 = vld [vmem:[%s935_s30 + $0xa0] sm:$0xf]  ;;  %v313_v29 = vld [vmem:[%s940_s6 + $0x98] sm:$0xf]  ;;  %618 = vst.msk [vmem:[%s978_s10 + $0x38] sm:$0xf] %vm603_vm0, %v585_v18  ;;  %v586_v30 = vmax.bf16 %v554_v19, %v506_v13  ;;  %v555_v31 = vmax.bf16 %v507_v20, %v505_v1 }
  0x44   : > { %v508_v32 = vmax.bf16 %v442_v23, %v376_v22  ;;  %v315_v33 = vld [vmem:[%s940_s6 + $0xa0] sm:$0xf]  ;;  %v379_v34 = vmax.bf16 %v313_v29, %v247_v27  ;;  %v445_v35 = vld [vmem:[%s945_s9 + $0x98] sm:$0xf]  ;;  %v510_v37 = vmax.bf16 %v444_v24, %v378_v26  ;;  %v248_v39 = vld [vmem:[%s935_s30 + $0x9c] sm:$0xf] }
  0x45   : > { %v447_v36 = vld [vmem:[%s945_s9 + $0xa0] sm:$0xf]  ;;  %v381_v38 = vmax.bf16 %v315_v33, %v249_v28  ;;  %v250_v40 = vld [vmem:[%s935_s30 + $0xa4] sm:$0xf]  ;;  %v314_v41 = vld [vmem:[%s940_s6 + $0x9c] sm:$0xf]  ;;  %v587_v42 = vmax.bf16 %v555_v31, %v509_v25 }
  0x46   : > { %619 = vst.msk [vmem:[%s978_s10 + $0x3c] sm:$0xf] %vm603_vm0, %v586_v30  ;;  %v556_v43 = vmax.bf16 %v508_v32, %v506_v13  ;;  %v511_v44 = vmax.bf16 %v445_v35, %v379_v34  ;;  %v316_v45 = vld [vmem:[%s940_s6 + $0xa4] sm:$0xf]  ;;  %v380_v46 = vmax.bf16 %v314_v41, %v248_v39  ;;  %v446_v47 = vld [vmem:[%s945_s9 + $0x9c] sm:$0xf] }
  0x47   : > { %v448_v48 = vld [vmem:[%s945_s9 + $0xa4] sm:$0xf]  ;;  %v513_v49 = vmax.bf16 %v447_v36, %v381_v38  ;;  %v382_v50 = vmax.bf16 %v316_v45, %v250_v40  ;;  %v251_v51 = vld [vmem:[%s935_s30 + $0xa8] sm:$0xf]  ;;  %v253_v52 = vld [vmem:[%s935_s30 + $0xb0] sm:$0xf] }
  0x48   : > { %v317_v53 = vld [vmem:[%s940_s6 + $0xa8] sm:$0xf]  ;;  %620 = vst.msk [vmem:[%s978_s10 + $0x40] sm:$0xf] %vm603_vm0, %v587_v42  ;;  %v588_v54 = vmax.bf16 %v556_v43, %v510_v37  ;;  %v557_v55 = vmax.bf16 %v511_v44, %v509_v25  ;;  %v512_v56 = vmax.bf16 %v446_v47, %v380_v46  ;;  %v319_v57 = vld [vmem:[%s940_s6 + $0xb0] sm:$0xf] }
  0x49   : > { %v383_v58 = vmax.bf16 %v317_v53, %v251_v51  ;;  %v449_v59 = vld [vmem:[%s945_s9 + $0xa8] sm:$0xf]  ;;  %v451_v60 = vld [vmem:[%s945_s9 + $0xb0] sm:$0xf]  ;;  %v514_v61 = vmax.bf16 %v448_v48, %v382_v50  ;;  %v385_v62 = vmax.bf16 %v319_v57, %v253_v52  ;;  %v252_v63 = vld [vmem:[%s935_s30 + $0xac] sm:$0xf] }
  0x4a   : > { %v254_v0 = vld [vmem:[%s935_s30 + $0xb4] sm:$0xf]  ;;  %v318_v1 = vld [vmem:[%s940_s6 + $0xac] sm:$0xf]  ;;  %621 = vst.msk [vmem:[%s978_s10 + $0x44] sm:$0xf] %vm603_vm0, %v588_v54  ;;  %v589_v2 = vmax.bf16 %v557_v55, %v513_v49  ;;  %v558_v3 = vmax.bf16 %v512_v56, %v510_v37 }
  0x4b   : > { %v515_v4 = vmax.bf16 %v449_v59, %v383_v58  ;;  %v320_v5 = vld [vmem:[%s940_s6 + $0xb4] sm:$0xf]  ;;  %v384_v6 = vmax.bf16 %v318_v1, %v252_v63  ;;  %v450_v7 = vld [vmem:[%s945_s9 + $0xac] sm:$0xf]  ;;  %v517_v9 = vmax.bf16 %v451_v60, %v385_v62  ;;  %v255_v11 = vld [vmem:[%s935_s30 + $0xb8] sm:$0xf] }
  0x4c   : > { %v452_v8 = vld [vmem:[%s945_s9 + $0xb4] sm:$0xf]  ;;  %v386_v10 = vmax.bf16 %v320_v5, %v254_v0  ;;  %v257_v12 = vld [vmem:[%s935_s30 + $0xc0] sm:$0xf]  ;;  %v321_v13 = vld [vmem:[%s940_s6 + $0xb8] sm:$0xf]  ;;  %v590_v14 = vmax.bf16 %v558_v3, %v514_v61 }
  0x4d   : > { %622 = vst.msk [vmem:[%s978_s10 + $0x48] sm:$0xf] %vm603_vm0, %v589_v2  ;;  %v559_v15 = vmax.bf16 %v515_v4, %v513_v49  ;;  %v516_v16 = vmax.bf16 %v450_v7, %v384_v6  ;;  %v323_v17 = vld [vmem:[%s940_s6 + $0xc0] sm:$0xf]  ;;  %v387_v18 = vmax.bf16 %v321_v13, %v255_v11  ;;  %v453_v19 = vld [vmem:[%s945_s9 + $0xb8] sm:$0xf] }
  0x4e   : > { %v455_v20 = vld [vmem:[%s945_s9 + $0xc0] sm:$0xf]  ;;  %v518_v21 = vmax.bf16 %v452_v8, %v386_v10  ;;  %v389_v22 = vmax.bf16 %v323_v17, %v257_v12  ;;  %v256_v23 = vld [vmem:[%s935_s30 + $0xbc] sm:$0xf]  ;;  %v258_v24 = vld [vmem:[%s935_s30 + $0xc4] sm:$0xf] }
  0x4f   : > { %v322_v25 = vld [vmem:[%s940_s6 + $0xbc] sm:$0xf]  ;;  %623 = vst.msk [vmem:[%s978_s10 + $0x4c] sm:$0xf] %vm603_vm0, %v590_v14  ;;  %v591_v26 = vmax.bf16 %v559_v15, %v517_v9  ;;  %v560_v27 = vmax.bf16 %v516_v16, %v514_v61  ;;  %v519_v28 = vmax.bf16 %v453_v19, %v387_v18  ;;  %v324_v29 = vld [vmem:[%s940_s6 + $0xc4] sm:$0xf] }
  0x50   : > { %v388_v30 = vmax.bf16 %v322_v25, %v256_v23  ;;  %v454_v31 = vld [vmem:[%s945_s9 + $0xbc] sm:$0xf]  ;;  %v456_v32 = vld [vmem:[%s945_s9 + $0xc4] sm:$0xf]  ;;  %v521_v33 = vmax.bf16 %v455_v20, %v389_v22  ;;  %v390_v34 = vmax.bf16 %v324_v29, %v258_v24  ;;  %v259_v35 = vld [vmem:[%s935_s30 + $0xc8] sm:$0xf] }
  0x51   : > { %v261_v36 = vld [vmem:[%s935_s30 + $0xd0] sm:$0xf]  ;;  %v325_v37 = vld [vmem:[%s940_s6 + $0xc8] sm:$0xf]  ;;  %624 = vst.msk [vmem:[%s978_s10 + $0x50] sm:$0xf] %vm603_vm0, %v591_v26  ;;  %v592_v38 = vmax.bf16 %v560_v27, %v518_v21  ;;  %v561_v39 = vmax.bf16 %v519_v28, %v517_v9 }
  0x52   : > { %v520_v40 = vmax.bf16 %v454_v31, %v388_v30  ;;  %v327_v41 = vld [vmem:[%s940_s6 + $0xd0] sm:$0xf]  ;;  %v391_v42 = vmax.bf16 %v325_v37, %v259_v35  ;;  %v457_v43 = vld [vmem:[%s945_s9 + $0xc8] sm:$0xf]  ;;  %v522_v45 = vmax.bf16 %v456_v32, %v390_v34  ;;  %v260_v47 = vld [vmem:[%s935_s30 + $0xcc] sm:$0xf] }
  0x53   : > { %v459_v44 = vld [vmem:[%s945_s9 + $0xd0] sm:$0xf]  ;;  %v393_v46 = vmax.bf16 %v327_v41, %v261_v36  ;;  %v262_v48 = vld [vmem:[%s935_s30 + $0xd4] sm:$0xf]  ;;  %v326_v49 = vld [vmem:[%s940_s6 + $0xcc] sm:$0xf]  ;;  %v593_v50 = vmax.bf16 %v561_v39, %v521_v33 }
  0x54   : > { %625 = vst.msk [vmem:[%s978_s10 + $0x54] sm:$0xf] %vm603_vm0, %v592_v38  ;;  %v562_v51 = vmax.bf16 %v520_v40, %v518_v21  ;;  %v523_v52 = vmax.bf16 %v457_v43, %v391_v42  ;;  %v328_v53 = vld [vmem:[%s940_s6 + $0xd4] sm:$0xf]  ;;  %v392_v54 = vmax.bf16 %v326_v49, %v260_v47  ;;  %v458_v55 = vld [vmem:[%s945_s9 + $0xcc] sm:$0xf] }
  0x55   : > { %v460_v56 = vld [vmem:[%s945_s9 + $0xd4] sm:$0xf]  ;;  %v525_v57 = vmax.bf16 %v459_v44, %v393_v46  ;;  %v394_v58 = vmax.bf16 %v328_v53, %v262_v48  ;;  %v263_v59 = vld [vmem:[%s935_s30 + $0xd8] sm:$0xf]  ;;  %v265_v60 = vld [vmem:[%s935_s30 + $0xe0] sm:$0xf] }
  0x56   : > { %v329_v61 = vld [vmem:[%s940_s6 + $0xd8] sm:$0xf]  ;;  %626 = vst.msk [vmem:[%s978_s10 + $0x58] sm:$0xf] %vm603_vm0, %v593_v50  ;;  %v594_v62 = vmax.bf16 %v562_v51, %v522_v45  ;;  %v563_v63 = vmax.bf16 %v523_v52, %v521_v33  ;;  %v524_v0 = vmax.bf16 %v458_v55, %v392_v54  ;;  %v331_v1 = vld [vmem:[%s940_s6 + $0xe0] sm:$0xf] }
  0x57   : > { %v395_v2 = vmax.bf16 %v329_v61, %v263_v59  ;;  %v461_v3 = vld [vmem:[%s945_s9 + $0xd8] sm:$0xf]  ;;  %v463_v4 = vld [vmem:[%s945_s9 + $0xe0] sm:$0xf]  ;;  %v526_v5 = vmax.bf16 %v460_v56, %v394_v58  ;;  %v397_v6 = vmax.bf16 %v331_v1, %v265_v60  ;;  %v264_v7 = vld [vmem:[%s935_s30 + $0xdc] sm:$0xf] }
  0x58   : > { %v266_v8 = vld [vmem:[%s935_s30 + $0xe4] sm:$0xf]  ;;  %v330_v9 = vld [vmem:[%s940_s6 + $0xdc] sm:$0xf]  ;;  %627 = vst.msk [vmem:[%s978_s10 + $0x5c] sm:$0xf] %vm603_vm0, %v594_v62  ;;  %v595_v10 = vmax.bf16 %v563_v63, %v525_v57  ;;  %v564_v11 = vmax.bf16 %v524_v0, %v522_v45 }
  0x59   : > { %v527_v12 = vmax.bf16 %v461_v3, %v395_v2  ;;  %v332_v13 = vld [vmem:[%s940_s6 + $0xe4] sm:$0xf]  ;;  %v396_v14 = vmax.bf16 %v330_v9, %v264_v7  ;;  %v462_v15 = vld [vmem:[%s945_s9 + $0xdc] sm:$0xf]  ;;  %v529_v17 = vmax.bf16 %v463_v4, %v397_v6  ;;  %v267_v19 = vld [vmem:[%s935_s30 + $0xe8] sm:$0xf] }
  0x5a   : > { %v464_v16 = vld [vmem:[%s945_s9 + $0xe4] sm:$0xf]  ;;  %v398_v18 = vmax.bf16 %v332_v13, %v266_v8  ;;  %v269_v20 = vld [vmem:[%s935_s30 + $0xf0] sm:$0xf]  ;;  %v333_v21 = vld [vmem:[%s940_s6 + $0xe8] sm:$0xf]  ;;  %v596_v22 = vmax.bf16 %v564_v11, %v526_v5 }
  0x5b   : > { %628 = vst.msk [vmem:[%s978_s10 + $0x60] sm:$0xf] %vm603_vm0, %v595_v10  ;;  %v565_v23 = vmax.bf16 %v527_v12, %v525_v57  ;;  %v528_v24 = vmax.bf16 %v462_v15, %v396_v14  ;;  %v335_v25 = vld [vmem:[%s940_s6 + $0xf0] sm:$0xf]  ;;  %v399_v26 = vmax.bf16 %v333_v21, %v267_v19  ;;  %v465_v27 = vld [vmem:[%s945_s9 + $0xe8] sm:$0xf] }
  0x5c   : > { %v467_v28 = vld [vmem:[%s945_s9 + $0xf0] sm:$0xf]  ;;  %v530_v29 = vmax.bf16 %v464_v16, %v398_v18  ;;  %v401_v30 = vmax.bf16 %v335_v25, %v269_v20  ;;  %v268_v31 = vld [vmem:[%s935_s30 + $0xec] sm:$0xf]  ;;  %v270_v32 = vld [vmem:[%s935_s30 + $0xf4] sm:$0xf] }
  0x5d   : > { %v334_v33 = vld [vmem:[%s940_s6 + $0xec] sm:$0xf]  ;;  %629 = vst.msk [vmem:[%s978_s10 + $0x64] sm:$0xf] %vm603_vm0, %v596_v22  ;;  %v597_v34 = vmax.bf16 %v565_v23, %v529_v17  ;;  %v566_v35 = vmax.bf16 %v528_v24, %v526_v5  ;;  %v531_v36 = vmax.bf16 %v465_v27, %v399_v26  ;;  %v336_v37 = vld [vmem:[%s940_s6 + $0xf4] sm:$0xf] }
  0x5e   : > { %v400_v38 = vmax.bf16 %v334_v33, %v268_v31  ;;  %v466_v39 = vld [vmem:[%s945_s9 + $0xec] sm:$0xf]  ;;  %v468_v40 = vld [vmem:[%s945_s9 + $0xf4] sm:$0xf]  ;;  %v533_v41 = vmax.bf16 %v467_v28, %v401_v30  ;;  %v402_v42 = vmax.bf16 %v336_v37, %v270_v32  ;;  %v271_v43 = vld [vmem:[%s935_s30 + $0xf8] sm:$0xf] }
  0x5f   : > { %v273_v44 = vld [vmem:[%s935_s30 + $0x100] sm:$0xf]  ;;  %v337_v45 = vld [vmem:[%s940_s6 + $0xf8] sm:$0xf]  ;;  %630 = vst.msk [vmem:[%s978_s10 + $0x68] sm:$0xf] %vm603_vm0, %v597_v34  ;;  %v598_v46 = vmax.bf16 %v566_v35, %v530_v29  ;;  %v567_v47 = vmax.bf16 %v531_v36, %v529_v17 }
  0x60   : > { %v532_v48 = vmax.bf16 %v466_v39, %v400_v38  ;;  %v339_v49 = vld [vmem:[%s940_s6 + $0x100] sm:$0xf]  ;;  %v403_v50 = vmax.bf16 %v337_v45, %v271_v43  ;;  %v469_v51 = vld [vmem:[%s945_s9 + $0xf8] sm:$0xf]  ;;  %v534_v53 = vmax.bf16 %v468_v40, %v402_v42  ;;  %v272_v55 = vld [vmem:[%s935_s30 + $0xfc] sm:$0xf] }
  0x61   : > { %v471_v52 = vld [vmem:[%s945_s9 + $0x100] sm:$0xf]  ;;  %v405_v54 = vmax.bf16 %v339_v49, %v273_v44  ;;  %v274_v56 = vld [vmem:[%s935_s30 + $0x104] sm:$0xf]  ;;  %v338_v57 = vld [vmem:[%s940_s6 + $0xfc] sm:$0xf]  ;;  %v599_v58 = vmax.bf16 %v567_v47, %v533_v41 }
  0x62   : > { %631 = vst.msk [vmem:[%s978_s10 + $0x6c] sm:$0xf] %vm603_vm0, %v598_v46  ;;  %v568_v59 = vmax.bf16 %v532_v48, %v530_v29  ;;  %v535_v60 = vmax.bf16 %v469_v51, %v403_v50  ;;  %v340_v61 = vld [vmem:[%s940_s6 + $0x104] sm:$0xf]  ;;  %v404_v62 = vmax.bf16 %v338_v57, %v272_v55  ;;  %v470_v63 = vld [vmem:[%s945_s9 + $0xfc] sm:$0xf] }
  0x63   : > { %v472_v0 = vld [vmem:[%s945_s9 + $0x104] sm:$0xf]  ;;  %v537_v1 = vmax.bf16 %v471_v52, %v405_v54  ;;  %v406_v2 = vmax.bf16 %v340_v61, %v274_v56  ;;  %632 = vst.msk [vmem:[%s978_s10 + $0x70] sm:$0xf] %vm603_vm0, %v599_v58  ;;  %s854_s27 = smov [#allocation2]  }
  0x64   : > { %v600_v3 = vmax.bf16 %v568_v59, %v534_v53  ;;  %v569_v4 = vmax.bf16 %v535_v60, %v533_v41  ;;  %v536_v5 = vmax.bf16 %v470_v63, %v404_v62  ;;  %s796_s28 = sshll.u32 %s854_s27, 4  ;;  %s797_s28 = int_to_ptr.vmem [resolvable:$false] %s796_s28 }
  0x65   : > { %v538_v6 = vmax.bf16 %v472_v0, %v406_v2  ;;  %s798_s29 = scalar_lea.vmem %s797_s28, 4096  ;;  %p799_p0 = scmp.lt.s32.totalorder %s1215_s17, %s797_s28 }
  0x66   : > { %633 = vst.msk [vmem:[%s978_s10 + $0x74] sm:$0xf] %vm603_vm0, %v600_v3  ;;  %v601_v7 = vmax.bf16 %v569_v4, %v537_v1  ;;  %v570_v8 = vmax.bf16 %v536_v5, %v534_v53  ;;  %p800_p1 = scmp.lt.s32.totalorder %s798_s29, %s792_s26 }
  0x68   : > { %634 = vst.msk [vmem:[%s978_s10 + $0x78] sm:$0xf] %vm603_vm0, %v601_v7  ;;  %v602_v9 = vmax.bf16 %v570_v8, %v538_v6  ;;  %p801_p2 = por %p800_p1, %p799_p0 }
  0x6a   : > { %635 = vst.msk [vmem:[%s978_s10 + $0x7c] sm:$0xf] %vm603_vm0, %v602_v9  ;;  %p802_p3 = pnand %p801_p2, %p795_p13 }
  0x6c   : > { %805 = shalt.err (!%p802_p3)
}
  0x6d   : > { %s806_s24 = scalar_lea.hbm %s1213_s25, 2048  ;;  %s810_s5 = scalar_lea.hbm %s1266_s3, 4096 }
  0x6e   : > { %p807_p4 = scmp.ne.s32.totalorder %s1213_s25, %s806_s24  ;;  %p811_p9 = scmp.lt.s32.totalorder %s1213_s25, %s1266_s3 }
  0x6f   : > { %p812_p10 = scmp.lt.s32.totalorder %s810_s5, %s806_s24 }
  0x70   : > { %p808_p7 = pnand %p807_p4, %p915_p5 }
  0x71   : > { %p813_p11 = por %p812_p10, %p811_p9 }
  0x72   : > { %p809_p8 = pneg %p808_p7 }
  0x74   : > { %p814_p12 = pnand %p813_p11, %p809_p8 }
  0x76   : > { %817 = shalt.err (!%p814_p12)
}
  0x77   : > { %s855_s8 = smov 64   ;;  %s856_s9 = smov 4  }
  0x78   : > { %751 = dma.vmem_to_hbm [thread:$0]  (%p915_p5), %s1215_s17, 2048, %s1213_s25, %s1223_s16, %s855_s8, %s855_s8, %s856_s9  }
  0x79 PF: > { %p757_p13 = scmp.ge.s32.totalorder %s852_s15, 2  ;;  %s665_s10 = sand.u32 1, %s840_s12  }
  0x7a   : > { %s666_s11 = scalar_lea.sflag [#allocation3], %s665_s10 }
  0x7b   : > { %p754_p0 = pnand %p757_p13, %p919_p6 }
  0x7d   : > { %p755_p1 = pneg %p754_p0 }
  0x7f   : > { %835 = dma.done.wait (%p755_p1), %s666_s11, 2048  }
  0x80   : > { %837 = vsyncadd (%p755_p1), %s666_s11, 4294965248  ;;  %p13_p2 = scmp.ge.s32.totalorder %s902_s18, 4   ;;  %s1269_s12 = smov %s844_s13 }
  0x81   : > { %s1270_s13 = smov %s848_s14  ;;  %s1271_s14 = smov %s913_s21 }
  0x82   : > { %s1272_s15 = smov %s902_s18  ;;  %15 = sbr.rel (!%p13_p2) target bundleno = 3 (0x3), region = 73 }
  0x87   :  { %671 = vsyncpa [#allocation3], 1 }
  0x88   :  { %673 = vsyncpa [#allocation3 + $0x1], 1 }

</bundles_post_ra>
